<compile_context>
chip_gen: v5e
topology: v5e:2x2
jax: 0.10.0
libtpu: 0.0.40
codegen_flags: <defaults>
</compile_context>

<pallas_src>
import jax
import jax.numpy as jnp
from jax import lax
from jax.experimental import pallas as pl
from jax.experimental.pallas import tpu as pltpu

HIDDEN_SIZE = 200
INPUT_SIZE = 8
OUTPUT_SIZE = 3
LANE = 128


def _usv_rnn_kernel(x_ref, w_ih_ref, w_hh_ref, b_ref, w_fc_ref, b_fc_ref,
                    out_ref, pre_ref):
    """Whole-sequence RNN + final linear; everything resident in VMEM.

    x_ref    : (B, T, I)   raw batch-first input (no wrapper layout op)
    w_ih_ref : (I, Hp)     zero-padded columns H..Hp
    w_hh_ref : (Hp, Hp)    zero-padded rows/cols H..Hp
    b_ref    : (1, Hp)     b_ih + b_hh, zero-padded
    w_fc_ref : (Hp, O)     zero-padded rows H..Hp
    b_fc_ref : (1, O)
    out_ref  : (B, O)
    pre_ref  : VMEM scratch (T, B, Hp) — one tile-aligned plane per timestep
    """
    batch, seq_len, _ = x_ref.shape
    hp = w_hh_ref.shape[0]

    # ---- Phase 1: input projection (no recurrent dependency).  T tiny K=8
    # matmuls writing time-major planes; one-time cost, off the serial path.
    x = x_ref[...]                       # (B, T, I), tiny
    w_ih = w_ih_ref[...]                 # (I, Hp), hoisted out of the loop
    b = b_ref[...]                       # (1, Hp),  hoisted out of the loop
    for t in range(seq_len):             # static Python loop (one-time phase)
        pre_ref[t] = (jnp.dot(x[:, t, :], w_ih,
                              preferred_element_type=jnp.float32) + b)

    # ---- Phase 2: serial recurrence — one MXU op + one EUP tanh per step.
    # W_hh is read from the ref each iteration (not hoisted to a value) so the
    # 64-vreg weight is not forced live across the unrolled body.
    def step(t, h):
        pre_t = pre_ref[t]               # (B, Hp) tile-aligned plane load
        return jnp.tanh(pre_t + jnp.dot(h, w_hh_ref[...],
                                        preferred_element_type=jnp.float32))

    h_last = lax.fori_loop(0, seq_len, step,
                           jnp.zeros((batch, hp), jnp.float32),
                           unroll=True)

    # ---- Phase 3: final linear on the last hidden state (valid rows only —
    # there are no pad rows, so the full store is exactly the valid output).
    out_ref[...] = (jnp.dot(h_last, w_fc_ref[...],
                            preferred_element_type=jnp.float32)
                    + b_fc_ref[...])


def prepare_params(w_ih, w_hh, b_ih, b_hh, w_fc, b_fc):
    """One-time conversion of PyTorch-layout params to kernel layout.

    PyTorch layout: w_ih (H, I), w_hh (H, H), b_ih/b_hh (H,), w_fc (O, H),
    b_fc (O,).  Kernel layout: right-multiply form, hidden padded to a
    multiple of 128 with zeros (pad lanes of h remain exactly 0).
    """
    H, I = w_ih.shape
    O = w_fc.shape[0]
    Hp = ((H + LANE - 1) // LANE) * LANE

    f32 = jnp.float32
    w_ih_t = jnp.zeros((I, Hp), f32).at[:, :H].set(w_ih.T.astype(f32))
    w_hh_t = jnp.zeros((Hp, Hp), f32).at[:H, :H].set(w_hh.T.astype(f32))
    b_sum = jnp.zeros((1, Hp), f32).at[0, :H].set((b_ih + b_hh).astype(f32))
    w_fc_t = jnp.zeros((Hp, O), f32).at[:H, :].set(w_fc.T.astype(f32))
    b_fc_2d = b_fc.astype(f32)[None, :]
    return w_ih_t, w_hh_t, b_sum, w_fc_t, b_fc_2d


@jax.jit
def usv_rnn_forward(x, w_ih_t, w_hh_t, b_sum, w_fc_t, b_fc_2d):
    """x: (B, T, I) batch-first.  Params already prepared via prepare_params.

    No per-call layout ops: x goes to the kernel untouched; all layout work
    (time-major planes, hidden padding) lives in prepare_params / the kernel.
    """
    B, T, I = x.shape
    Hp = w_hh_t.shape[0]
    O = w_fc_t.shape[1]

    vmem_spec = pl.BlockSpec(memory_space=pltpu.MemorySpace.VMEM)

    return pl.pallas_call(
        _usv_rnn_kernel,
        out_shape=jax.ShapeDtypeStruct((B, O), jnp.float32),
        in_specs=[vmem_spec] * 6,
        out_specs=vmem_spec,
        # (T, B, Hp) pre-activation table: 64 KiB at demo sizes.  For much
        # larger T this should be tiled over a T-chunk grid axis instead of
        # fully materialized (v7x has half the VMEM of v5e/v6e).
        scratch_shapes=[pltpu.VMEM((T, B, Hp), jnp.float32)],
    )(x.astype(jnp.float32), w_ih_t, w_hh_t, b_sum, w_fc_t, b_fc_2d)


def _reference_forward(x, w_ih, w_hh, b_ih, b_hh, w_fc, b_fc):
    """Pure-JAX reference mirroring torch.nn.RNN(batch_first=True) + Linear."""
    B, T, _ = x.shape
    H = w_hh.shape[0]
    h = jnp.zeros((B, H), jnp.float32)
    for t in range(T):
        h = jnp.tanh(x[:, t, :] @ w_ih.T + b_ih + h @ w_hh.T + b_hh)
    return h @ w_fc.T + b_fc


def _init_params(key, input_size, hidden_size, output_size):
    """Deterministic init mimicking PyTorch's U(-1/sqrt(H), 1/sqrt(H))."""
    ks = jax.random.split(key, 6)
    k_rnn = 1.0 / jnp.sqrt(hidden_size)
    k_fc = 1.0 / jnp.sqrt(hidden_size)
    w_ih = jax.random.uniform(ks[0], (hidden_size, input_size),
                              jnp.float32, -k_rnn, k_rnn)
    w_hh = jax.random.uniform(ks[1], (hidden_size, hidden_size),
                              jnp.float32, -k_rnn, k_rnn)
    b_ih = jax.random.uniform(ks[2], (hidden_size,), jnp.float32, -k_rnn, k_rnn)
    b_hh = jax.random.uniform(ks[3], (hidden_size,), jnp.float32, -k_rnn, k_rnn)
    w_fc = jax.random.uniform(ks[4], (output_size, hidden_size),
                              jnp.float32, -k_fc, k_fc)
    b_fc = jax.random.uniform(ks[5], (output_size,), jnp.float32, -k_fc, k_fc)
    return w_ih, w_hh, b_ih, b_hh, w_fc, b_fc


if __name__ == "__main__":
    key = jax.random.PRNGKey(0)
    k_x, k_p = jax.random.split(key)

    B, T = 2, 8  # small batch / sequence length
    x = jax.random.normal(k_x, (B, T, INPUT_SIZE), jnp.float32)

    params = _init_params(k_p, INPUT_SIZE, HIDDEN_SIZE, OUTPUT_SIZE)
    prepped = prepare_params(*params)   # one-time layout prep (not per call)

    out = usv_rnn_forward(x, *prepped)
    out = jax.block_until_ready(out)

    ref = _reference_forward(x, *params)
    assert out.shape == (B, OUTPUT_SIZE)
    assert jnp.allclose(out, ref, atol=1e-4, rtol=1e-3), (out, ref)

    print("KERNEL_OK")
</pallas_src>

<mosaic_0001>
module attributes {stable_mosaic.version = 11 : i64} {
  func.func @_usv_rnn_kernel(%arg0: memref<2x8x8xf32, #tpu.memory_space<vmem>>, %arg1: memref<8x256xf32, #tpu.memory_space<vmem>>, %arg2: memref<256x256xf32, #tpu.memory_space<vmem>>, %arg3: memref<1x256xf32, #tpu.memory_space<vmem>>, %arg4: memref<256x3xf32, #tpu.memory_space<vmem>>, %arg5: memref<1x3xf32, #tpu.memory_space<vmem>>, %arg6: memref<2x3xf32, #tpu.memory_space<vmem>>, %arg7: memref<8x2x256xf32, #tpu.memory_space<vmem>>) attributes {dimension_semantics = [], scalar_prefetch = 0 : i64, scratch_operands = 1 : i64, tpu.core_type = #tpu.core_type<tc>} {
    %c0 = arith.constant 0 : index
    %c0_0 = arith.constant 0 : index
    %c0_1 = arith.constant 0 : index
    %0 = vector.load %arg0[%c0, %c0_0, %c0_1] : memref<2x8x8xf32, #tpu.memory_space<vmem>>, vector<2x8x8xf32>
    %c0_2 = arith.constant 0 : index
    %c0_3 = arith.constant 0 : index
    %1 = vector.load %arg1[%c0_2, %c0_3] : memref<8x256xf32, #tpu.memory_space<vmem>>, vector<8x256xf32>
    %c0_4 = arith.constant 0 : index
    %c0_5 = arith.constant 0 : index
    %2 = vector.load %arg3[%c0_4, %c0_5] : memref<1x256xf32, #tpu.memory_space<vmem>>, vector<1x256xf32>
    %3 = vector.extract_strided_slice %0 {offsets = [0, 0, 0], sizes = [2, 1, 8], strides = [1, 1, 1]} : vector<2x8x8xf32> to vector<2x1x8xf32>
    %4 = vector.shape_cast %3 : vector<2x1x8xf32> to vector<2x8xf32>
    %cst = arith.constant dense<0.000000e+00> : vector<2x256xf32>
    %5 = tpu.matmul %4, %1, %cst {dimension_numbers = #tpu.dot_dimension_numbers<[1], [0], [0], [1], [0, 0, 1, 1], [], []>} : vector<2x8xf32>, vector<8x256xf32>, vector<2x256xf32> -> vector<2x256xf32>
    %6 = vector.broadcast %2 : vector<1x256xf32> to vector<2x256xf32>
    %7 = arith.addf %5, %6 : vector<2x256xf32>
    %c0_6 = arith.constant 0 : index
    %c0_7 = arith.constant 0 : index
    %c0_8 = arith.constant 0 : index
    %8 = vector.load %arg7[%c0_6, %c0_7, %c0_8] : memref<8x2x256xf32, #tpu.memory_space<vmem>>, vector<1x2x256xf32>
    %9 = vector.shape_cast %8 : vector<1x2x256xf32> to vector<2x256xf32>
    %10 = vector.shape_cast %7 : vector<2x256xf32> to vector<1x2x256xf32>
    tpu.vector_store %arg7[%c0_6, %c0_7, %c0_8], %10 {strides = array<i32>} : memref<8x2x256xf32, #tpu.memory_space<vmem>>, vector<1x2x256xf32>,
    %11 = vector.extract_strided_slice %0 {offsets = [0, 1, 0], sizes = [2, 1, 8], strides = [1, 1, 1]} : vector<2x8x8xf32> to vector<2x1x8xf32>
    %12 = vector.shape_cast %11 : vector<2x1x8xf32> to vector<2x8xf32>
    %cst_9 = arith.constant dense<0.000000e+00> : vector<2x256xf32>
    %13 = tpu.matmul %12, %1, %cst_9 {dimension_numbers = #tpu.dot_dimension_numbers<[1], [0], [0], [1], [0, 0, 1, 1], [], []>} : vector<2x8xf32>, vector<8x256xf32>, vector<2x256xf32> -> vector<2x256xf32>
    %14 = vector.broadcast %2 : vector<1x256xf32> to vector<2x256xf32>
    %15 = arith.addf %13, %14 : vector<2x256xf32>
    %c1 = arith.constant 1 : index
    %c0_10 = arith.constant 0 : index
    %c0_11 = arith.constant 0 : index
    %16 = vector.load %arg7[%c1, %c0_10, %c0_11] : memref<8x2x256xf32, #tpu.memory_space<vmem>>, vector<1x2x256xf32>
    %17 = vector.shape_cast %16 : vector<1x2x256xf32> to vector<2x256xf32>
    %18 = vector.shape_cast %15 : vector<2x256xf32> to vector<1x2x256xf32>
    tpu.vector_store %arg7[%c1, %c0_10, %c0_11], %18 {strides = array<i32>} : memref<8x2x256xf32, #tpu.memory_space<vmem>>, vector<1x2x256xf32>,
    %19 = vector.extract_strided_slice %0 {offsets = [0, 2, 0], sizes = [2, 1, 8], strides = [1, 1, 1]} : vector<2x8x8xf32> to vector<2x1x8xf32>
    %20 = vector.shape_cast %19 : vector<2x1x8xf32> to vector<2x8xf32>
    %cst_12 = arith.constant dense<0.000000e+00> : vector<2x256xf32>
    %21 = tpu.matmul %20, %1, %cst_12 {dimension_numbers = #tpu.dot_dimension_numbers<[1], [0], [0], [1], [0, 0, 1, 1], [], []>} : vector<2x8xf32>, vector<8x256xf32>, vector<2x256xf32> -> vector<2x256xf32>
    %22 = vector.broadcast %2 : vector<1x256xf32> to vector<2x256xf32>
    %23 = arith.addf %21, %22 : vector<2x256xf32>
    %c2 = arith.constant 2 : index
    %c0_13 = arith.constant 0 : index
    %c0_14 = arith.constant 0 : index
    %24 = vector.load %arg7[%c2, %c0_13, %c0_14] : memref<8x2x256xf32, #tpu.memory_space<vmem>>, vector<1x2x256xf32>
    %25 = vector.shape_cast %24 : vector<1x2x256xf32> to vector<2x256xf32>
    %26 = vector.shape_cast %23 : vector<2x256xf32> to vector<1x2x256xf32>
    tpu.vector_store %arg7[%c2, %c0_13, %c0_14], %26 {strides = array<i32>} : memref<8x2x256xf32, #tpu.memory_space<vmem>>, vector<1x2x256xf32>,
    %27 = vector.extract_strided_slice %0 {offsets = [0, 3, 0], sizes = [2, 1, 8], strides = [1, 1, 1]} : vector<2x8x8xf32> to vector<2x1x8xf32>
    %28 = vector.shape_cast %27 : vector<2x1x8xf32> to vector<2x8xf32>
    %cst_15 = arith.constant dense<0.000000e+00> : vector<2x256xf32>
    %29 = tpu.matmul %28, %1, %cst_15 {dimension_numbers = #tpu.dot_dimension_numbers<[1], [0], [0], [1], [0, 0, 1, 1], [], []>} : vector<2x8xf32>, vector<8x256xf32>, vector<2x256xf32> -> vector<2x256xf32>
    %30 = vector.broadcast %2 : vector<1x256xf32> to vector<2x256xf32>
    %31 = arith.addf %29, %30 : vector<2x256xf32>
    %c3 = arith.constant 3 : index
    %c0_16 = arith.constant 0 : index
    %c0_17 = arith.constant 0 : index
    %32 = vector.load %arg7[%c3, %c0_16, %c0_17] : memref<8x2x256xf32, #tpu.memory_space<vmem>>, vector<1x2x256xf32>
    %33 = vector.shape_cast %32 : vector<1x2x256xf32> to vector<2x256xf32>
    %34 = vector.shape_cast %31 : vector<2x256xf32> to vector<1x2x256xf32>
    tpu.vector_store %arg7[%c3, %c0_16, %c0_17], %34 {strides = array<i32>} : memref<8x2x256xf32, #tpu.memory_space<vmem>>, vector<1x2x256xf32>,
    %35 = vector.extract_strided_slice %0 {offsets = [0, 4, 0], sizes = [2, 1, 8], strides = [1, 1, 1]} : vector<2x8x8xf32> to vector<2x1x8xf32>
    %36 = vector.shape_cast %35 : vector<2x1x8xf32> to vector<2x8xf32>
    %cst_18 = arith.constant dense<0.000000e+00> : vector<2x256xf32>
    %37 = tpu.matmul %36, %1, %cst_18 {dimension_numbers = #tpu.dot_dimension_numbers<[1], [0], [0], [1], [0, 0, 1, 1], [], []>} : vector<2x8xf32>, vector<8x256xf32>, vector<2x256xf32> -> vector<2x256xf32>
    %38 = vector.broadcast %2 : vector<1x256xf32> to vector<2x256xf32>
    %39 = arith.addf %37, %38 : vector<2x256xf32>
    %c4 = arith.constant 4 : index
    %c0_19 = arith.constant 0 : index
    %c0_20 = arith.constant 0 : index
    %40 = vector.load %arg7[%c4, %c0_19, %c0_20] : memref<8x2x256xf32, #tpu.memory_space<vmem>>, vector<1x2x256xf32>
    %41 = vector.shape_cast %40 : vector<1x2x256xf32> to vector<2x256xf32>
    %42 = vector.shape_cast %39 : vector<2x256xf32> to vector<1x2x256xf32>
    tpu.vector_store %arg7[%c4, %c0_19, %c0_20], %42 {strides = array<i32>} : memref<8x2x256xf32, #tpu.memory_space<vmem>>, vector<1x2x256xf32>,
    %43 = vector.extract_strided_slice %0 {offsets = [0, 5, 0], sizes = [2, 1, 8], strides = [1, 1, 1]} : vector<2x8x8xf32> to vector<2x1x8xf32>
    %44 = vector.shape_cast %43 : vector<2x1x8xf32> to vector<2x8xf32>
    %cst_21 = arith.constant dense<0.000000e+00> : vector<2x256xf32>
    %45 = tpu.matmul %44, %1, %cst_21 {dimension_numbers = #tpu.dot_dimension_numbers<[1], [0], [0], [1], [0, 0, 1, 1], [], []>} : vector<2x8xf32>, vector<8x256xf32>, vector<2x256xf32> -> vector<2x256xf32>
    %46 = vector.broadcast %2 : vector<1x256xf32> to vector<2x256xf32>
    %47 = arith.addf %45, %46 : vector<2x256xf32>
    %c5 = arith.constant 5 : index
    %c0_22 = arith.constant 0 : index
    %c0_23 = arith.constant 0 : index
    %48 = vector.load %arg7[%c5, %c0_22, %c0_23] : memref<8x2x256xf32, #tpu.memory_space<vmem>>, vector<1x2x256xf32>
    %49 = vector.shape_cast %48 : vector<1x2x256xf32> to vector<2x256xf32>
    %50 = vector.shape_cast %47 : vector<2x256xf32> to vector<1x2x256xf32>
    tpu.vector_store %arg7[%c5, %c0_22, %c0_23], %50 {strides = array<i32>} : memref<8x2x256xf32, #tpu.memory_space<vmem>>, vector<1x2x256xf32>,
    %51 = vector.extract_strided_slice %0 {offsets = [0, 6, 0], sizes = [2, 1, 8], strides = [1, 1, 1]} : vector<2x8x8xf32> to vector<2x1x8xf32>
    %52 = vector.shape_cast %51 : vector<2x1x8xf32> to vector<2x8xf32>
    %cst_24 = arith.constant dense<0.000000e+00> : vector<2x256xf32>
    %53 = tpu.matmul %52, %1, %cst_24 {dimension_numbers = #tpu.dot_dimension_numbers<[1], [0], [0], [1], [0, 0, 1, 1], [], []>} : vector<2x8xf32>, vector<8x256xf32>, vector<2x256xf32> -> vector<2x256xf32>
    %54 = vector.broadcast %2 : vector<1x256xf32> to vector<2x256xf32>
    %55 = arith.addf %53, %54 : vector<2x256xf32>
    %c6 = arith.constant 6 : index
    %c0_25 = arith.constant 0 : index
    %c0_26 = arith.constant 0 : index
    %56 = vector.load %arg7[%c6, %c0_25, %c0_26] : memref<8x2x256xf32, #tpu.memory_space<vmem>>, vector<1x2x256xf32>
    %57 = vector.shape_cast %56 : vector<1x2x256xf32> to vector<2x256xf32>
    %58 = vector.shape_cast %55 : vector<2x256xf32> to vector<1x2x256xf32>
    tpu.vector_store %arg7[%c6, %c0_25, %c0_26], %58 {strides = array<i32>} : memref<8x2x256xf32, #tpu.memory_space<vmem>>, vector<1x2x256xf32>,
    %59 = vector.extract_strided_slice %0 {offsets = [0, 7, 0], sizes = [2, 1, 8], strides = [1, 1, 1]} : vector<2x8x8xf32> to vector<2x1x8xf32>
    %60 = vector.shape_cast %59 : vector<2x1x8xf32> to vector<2x8xf32>
    %cst_27 = arith.constant dense<0.000000e+00> : vector<2x256xf32>
    %61 = tpu.matmul %60, %1, %cst_27 {dimension_numbers = #tpu.dot_dimension_numbers<[1], [0], [0], [1], [0, 0, 1, 1], [], []>} : vector<2x8xf32>, vector<8x256xf32>, vector<2x256xf32> -> vector<2x256xf32>
    %62 = vector.broadcast %2 : vector<1x256xf32> to vector<2x256xf32>
    %63 = arith.addf %61, %62 : vector<2x256xf32>
    %c7 = arith.constant 7 : index
    %c0_28 = arith.constant 0 : index
    %c0_29 = arith.constant 0 : index
    %64 = vector.load %arg7[%c7, %c0_28, %c0_29] : memref<8x2x256xf32, #tpu.memory_space<vmem>>, vector<1x2x256xf32>
    %65 = vector.shape_cast %64 : vector<1x2x256xf32> to vector<2x256xf32>
    %66 = vector.shape_cast %63 : vector<2x256xf32> to vector<1x2x256xf32>
    tpu.vector_store %arg7[%c7, %c0_28, %c0_29], %66 {strides = array<i32>} : memref<8x2x256xf32, #tpu.memory_space<vmem>>, vector<1x2x256xf32>,
    %cst_30 = arith.constant 0.000000e+00 : f32
    %67 = vector.broadcast %cst_30 : f32 to vector<2x256xf32>
    %c0_i32 = arith.constant 0 : i32
    %68 = arith.index_cast %c0_i32 : i32 to index
    %c0_31 = arith.constant 0 : index
    %c0_32 = arith.constant 0 : index
    %69 = vector.load %arg7[%68, %c0_31, %c0_32] : memref<8x2x256xf32, #tpu.memory_space<vmem>>, vector<1x2x256xf32>
    %70 = vector.shape_cast %69 : vector<1x2x256xf32> to vector<2x256xf32>
    %c0_33 = arith.constant 0 : index
    %c0_34 = arith.constant 0 : index
    %71 = vector.load %arg2[%c0_33, %c0_34] : memref<256x256xf32, #tpu.memory_space<vmem>>, vector<256x256xf32>
    %cst_35 = arith.constant dense<0.000000e+00> : vector<2x256xf32>
    %72 = tpu.matmul %67, %71, %cst_35 {dimension_numbers = #tpu.dot_dimension_numbers<[1], [0], [0], [1], [0, 0, 1, 1], [], []>} : vector<2x256xf32>, vector<256x256xf32>, vector<2x256xf32> -> vector<2x256xf32>
    %73 = arith.addf %70, %72 : vector<2x256xf32>
    %74 = math.tanh %73 : vector<2x256xf32>
    %c1_i32 = arith.constant 1 : i32
    %75 = arith.index_cast %c1_i32 : i32 to index
    %c0_36 = arith.constant 0 : index
    %c0_37 = arith.constant 0 : index
    %76 = vector.load %arg7[%75, %c0_36, %c0_37] : memref<8x2x256xf32, #tpu.memory_space<vmem>>, vector<1x2x256xf32>
    %77 = vector.shape_cast %76 : vector<1x2x256xf32> to vector<2x256xf32>
    %c0_38 = arith.constant 0 : index
    %c0_39 = arith.constant 0 : index
    %78 = vector.load %arg2[%c0_38, %c0_39] : memref<256x256xf32, #tpu.memory_space<vmem>>, vector<256x256xf32>
    %cst_40 = arith.constant dense<0.000000e+00> : vector<2x256xf32>
    %79 = tpu.matmul %74, %78, %cst_40 {dimension_numbers = #tpu.dot_dimension_numbers<[1], [0], [0], [1], [0, 0, 1, 1], [], []>} : vector<2x256xf32>, vector<256x256xf32>, vector<2x256xf32> -> vector<2x256xf32>
    %80 = arith.addf %77, %79 : vector<2x256xf32>
    %81 = math.tanh %80 : vector<2x256xf32>
    %c2_i32 = arith.constant 2 : i32
    %82 = arith.index_cast %c2_i32 : i32 to index
    %c0_41 = arith.constant 0 : index
    %c0_42 = arith.constant 0 : index
    %83 = vector.load %arg7[%82, %c0_41, %c0_42] : memref<8x2x256xf32, #tpu.memory_space<vmem>>, vector<1x2x256xf32>
    %84 = vector.shape_cast %83 : vector<1x2x256xf32> to vector<2x256xf32>
    %c0_43 = arith.constant 0 : index
    %c0_44 = arith.constant 0 : index
    %85 = vector.load %arg2[%c0_43, %c0_44] : memref<256x256xf32, #tpu.memory_space<vmem>>, vector<256x256xf32>
    %cst_45 = arith.constant dense<0.000000e+00> : vector<2x256xf32>
    %86 = tpu.matmul %81, %85, %cst_45 {dimension_numbers = #tpu.dot_dimension_numbers<[1], [0], [0], [1], [0, 0, 1, 1], [], []>} : vector<2x256xf32>, vector<256x256xf32>, vector<2x256xf32> -> vector<2x256xf32>
    %87 = arith.addf %84, %86 : vector<2x256xf32>
    %88 = math.tanh %87 : vector<2x256xf32>
    %c3_i32 = arith.constant 3 : i32
    %89 = arith.index_cast %c3_i32 : i32 to index
    %c0_46 = arith.constant 0 : index
    %c0_47 = arith.constant 0 : index
    %90 = vector.load %arg7[%89, %c0_46, %c0_47] : memref<8x2x256xf32, #tpu.memory_space<vmem>>, vector<1x2x256xf32>
    %91 = vector.shape_cast %90 : vector<1x2x256xf32> to vector<2x256xf32>
    %c0_48 = arith.constant 0 : index
    %c0_49 = arith.constant 0 : index
    %92 = vector.load %arg2[%c0_48, %c0_49] : memref<256x256xf32, #tpu.memory_space<vmem>>, vector<256x256xf32>
    %cst_50 = arith.constant dense<0.000000e+00> : vector<2x256xf32>
    %93 = tpu.matmul %88, %92, %cst_50 {dimension_numbers = #tpu.dot_dimension_numbers<[1], [0], [0], [1], [0, 0, 1, 1], [], []>} : vector<2x256xf32>, vector<256x256xf32>, vector<2x256xf32> -> vector<2x256xf32>
    %94 = arith.addf %91, %93 : vector<2x256xf32>
    %95 = math.tanh %94 : vector<2x256xf32>
    %c4_i32 = arith.constant 4 : i32
    %96 = arith.index_cast %c4_i32 : i32 to index
    %c0_51 = arith.constant 0 : index
    %c0_52 = arith.constant 0 : index
    %97 = vector.load %arg7[%96, %c0_51, %c0_52] : memref<8x2x256xf32, #tpu.memory_space<vmem>>, vector<1x2x256xf32>
    %98 = vector.shape_cast %97 : vector<1x2x256xf32> to vector<2x256xf32>
    %c0_53 = arith.constant 0 : index
    %c0_54 = arith.constant 0 : index
    %99 = vector.load %arg2[%c0_53, %c0_54] : memref<256x256xf32, #tpu.memory_space<vmem>>, vector<256x256xf32>
    %cst_55 = arith.constant dense<0.000000e+00> : vector<2x256xf32>
    %100 = tpu.matmul %95, %99, %cst_55 {dimension_numbers = #tpu.dot_dimension_numbers<[1], [0], [0], [1], [0, 0, 1, 1], [], []>} : vector<2x256xf32>, vector<256x256xf32>, vector<2x256xf32> -> vector<2x256xf32>
    %101 = arith.addf %98, %100 : vector<2x256xf32>
    %102 = math.tanh %101 : vector<2x256xf32>
    %c5_i32 = arith.constant 5 : i32
    %103 = arith.index_cast %c5_i32 : i32 to index
    %c0_56 = arith.constant 0 : index
    %c0_57 = arith.constant 0 : index
    %104 = vector.load %arg7[%103, %c0_56, %c0_57] : memref<8x2x256xf32, #tpu.memory_space<vmem>>, vector<1x2x256xf32>
    %105 = vector.shape_cast %104 : vector<1x2x256xf32> to vector<2x256xf32>
    %c0_58 = arith.constant 0 : index
    %c0_59 = arith.constant 0 : index
    %106 = vector.load %arg2[%c0_58, %c0_59] : memref<256x256xf32, #tpu.memory_space<vmem>>, vector<256x256xf32>
    %cst_60 = arith.constant dense<0.000000e+00> : vector<2x256xf32>
    %107 = tpu.matmul %102, %106, %cst_60 {dimension_numbers = #tpu.dot_dimension_numbers<[1], [0], [0], [1], [0, 0, 1, 1], [], []>} : vector<2x256xf32>, vector<256x256xf32>, vector<2x256xf32> -> vector<2x256xf32>
    %108 = arith.addf %105, %107 : vector<2x256xf32>
    %109 = math.tanh %108 : vector<2x256xf32>
    %c6_i32 = arith.constant 6 : i32
    %110 = arith.index_cast %c6_i32 : i32 to index
    %c0_61 = arith.constant 0 : index
    %c0_62 = arith.constant 0 : index
    %111 = vector.load %arg7[%110, %c0_61, %c0_62] : memref<8x2x256xf32, #tpu.memory_space<vmem>>, vector<1x2x256xf32>
    %112 = vector.shape_cast %111 : vector<1x2x256xf32> to vector<2x256xf32>
    %c0_63 = arith.constant 0 : index
    %c0_64 = arith.constant 0 : index
    %113 = vector.load %arg2[%c0_63, %c0_64] : memref<256x256xf32, #tpu.memory_space<vmem>>, vector<256x256xf32>
    %cst_65 = arith.constant dense<0.000000e+00> : vector<2x256xf32>
    %114 = tpu.matmul %109, %113, %cst_65 {dimension_numbers = #tpu.dot_dimension_numbers<[1], [0], [0], [1], [0, 0, 1, 1], [], []>} : vector<2x256xf32>, vector<256x256xf32>, vector<2x256xf32> -> vector<2x256xf32>
    %115 = arith.addf %112, %114 : vector<2x256xf32>
    %116 = math.tanh %115 : vector<2x256xf32>
    %c7_i32 = arith.constant 7 : i32
    %117 = arith.index_cast %c7_i32 : i32 to index
    %c0_66 = arith.constant 0 : index
    %c0_67 = arith.constant 0 : index
    %118 = vector.load %arg7[%117, %c0_66, %c0_67] : memref<8x2x256xf32, #tpu.memory_space<vmem>>, vector<1x2x256xf32>
    %119 = vector.shape_cast %118 : vector<1x2x256xf32> to vector<2x256xf32>
    %c0_68 = arith.constant 0 : index
    %c0_69 = arith.constant 0 : index
    %120 = vector.load %arg2[%c0_68, %c0_69] : memref<256x256xf32, #tpu.memory_space<vmem>>, vector<256x256xf32>
    %cst_70 = arith.constant dense<0.000000e+00> : vector<2x256xf32>
    %121 = tpu.matmul %116, %120, %cst_70 {dimension_numbers = #tpu.dot_dimension_numbers<[1], [0], [0], [1], [0, 0, 1, 1], [], []>} : vector<2x256xf32>, vector<256x256xf32>, vector<2x256xf32> -> vector<2x256xf32>
    %122 = arith.addf %119, %121 : vector<2x256xf32>
    %123 = math.tanh %122 : vector<2x256xf32>
    %c8_i32 = arith.constant 8 : i32
    %c0_71 = arith.constant 0 : index
    %c0_72 = arith.constant 0 : index
    %124 = vector.load %arg4[%c0_71, %c0_72] : memref<256x3xf32, #tpu.memory_space<vmem>>, vector<256x3xf32>
    %cst_73 = arith.constant dense<0.000000e+00> : vector<2x3xf32>
    %125 = tpu.matmul %123, %124, %cst_73 {dimension_numbers = #tpu.dot_dimension_numbers<[1], [0], [0], [1], [0, 0, 1, 1], [], []>} : vector<2x256xf32>, vector<256x3xf32>, vector<2x3xf32> -> vector<2x3xf32>
    %c0_74 = arith.constant 0 : index
    %c0_75 = arith.constant 0 : index
    %126 = vector.load %arg5[%c0_74, %c0_75] : memref<1x3xf32, #tpu.memory_space<vmem>>, vector<1x3xf32>
    %127 = vector.broadcast %126 : vector<1x3xf32> to vector<2x3xf32>
    %128 = arith.addf %125, %127 : vector<2x3xf32>
    %c0_76 = arith.constant 0 : index
    %c0_77 = arith.constant 0 : index
    %129 = vector.load %arg6[%c0_76, %c0_77] : memref<2x3xf32, #tpu.memory_space<vmem>>, vector<2x3xf32>
    tpu.vector_store %arg6[%c0_76, %c0_77], %128 {strides = array<i32>} : memref<2x3xf32, #tpu.memory_space<vmem>>, vector<2x3xf32>,
    return
  }
}

</mosaic_0001>

<bundles_post_ra>
// kernel: usv_rnn_forward.1
= control target key start
LH: loop header
LB: loop body
LE: loop exit
PB: predicated region body
PF: predicated region fallthrough
CT: control target
= control target key end

     0   :  { %11 = vsyncpa [#allocation4], 0  ;;  %s2541_s0 = inlined_call_operand.vmem [shape: f32[2,8,8], index: 0, kind: input, shape index: {}]   ;;  %s2542_s1 = inlined_call_operand.vmem [shape: f32[8,256], index: 1, kind: input, shape index: {}]   ;;  %s2543_s2 = inlined_call_operand.hbm [shape: f32[256,256], index: 2, kind: input, shape index: {}]   ;;  %s2544_s3 = inlined_call_operand.vmem [shape: f32[1,256], index: 3, kind: input, shape index: {}]   ;;  %s2545_s4 = inlined_call_operand.vmem [shape: f32[256,3], index: 4, kind: input, shape index: {}]   ;;  %s2546_s5 = inlined_call_operand.vmem [shape: f32[1,3], index: 5, kind: input, shape index: {}]   ;;  %s2547_s6 = inlined_call_operand.hbm [shape: f32[2,3], index: 6, kind: output, shape index: {}]  }
   0x1   :  { %12 = vsyncpa [#allocation5], 0  ;;  %s21_s23 = sshll.u32 %s2543_s2, 4  ;;  %s1533_s24 = smov [#allocation3]   ;;  %s22_s23 = int_to_ptr.hbm [resolvable:$true] %s21_s23 }
   0x2   :  { %s23_s25 = sshll.u32 %s1533_s24, 4  ;;  %s1534_s26 = smov 256   ;;  %s24_s25 = int_to_ptr.vmem [resolvable:$true] %s23_s25 }
   0x3   :  { %s1535_s27 = smov 16  }
   0x4   :  { %29 = dma.hbm_to_vmem [thread:$0]  %s22_s23, 8192, %s24_s25, [#allocation4], %s1534_s26, %s1534_s26, %s1535_s27  }
   0x5   :  { %1529 = dma.done.wait [#allocation4], 8192  }
   0x6   :  { %1530 = vsyncadd [#allocation4], 4294959104  ;;  %v1579_v0 = vld [vmem:[%s2542_s1] sm:$0xff]  ;;  %v1584_v1 = vld [vmem:[%s2542_s1 + $0x8] sm:$0xff]  ;;  %vm53_vm0 = vcmask 1041409   ;;  %vm55_vm1 = vcmask 64512  }
   0x7   :  { %73 = vmatpush.msra.mxu2 %v1579_v0  ;;  %93 = vmatpush.msra.mxu3 %v1584_v1  ;;  %v1591_v2 = vld [vmem:[%s2541_s0] sm:$0xff]  ;;  %v1596_v3 = vld [vmem:[%s2541_s0 + $0x8] sm:$0xff]  ;;  %v1619_v11 = vld [vmem:[#allocation3 + $0xf0] sm:$0xff]  ;;  %vm101_vm2 = vcmask 1041408   ;;  %s1537_s19 = smov [#allocation6]   ;;  %s1369_s23 = sshll.u32 %s2547_s6, 4  ;;  %s1370_s23 = int_to_ptr.hbm [resolvable:$true] %s1369_s23 }
   0x8   :  { %v52_v4 = vrot.slane %v1596_v3, 7  ;;  %300 = vmatpush.msra.mxu1 %v1584_v1  ;;  %280 = vmatpush.msra.mxu0 %v1579_v0  ;;  %v105_v6 = vrot.slane %v1591_v2, 1  ;;  %v260_v7 = vrot.slane %v1591_v2, 4  ;;  %v261_v8 = vrot.slane %v1596_v3, 3  ;;  %v1621_v12 = vld [vmem:[#allocation3 + $0x1f0] sm:$0xff]  ;;  %v1629_v15 = vld [vmem:[#allocation3 + $0xe0] sm:$0xff] }
   0x9   :  { %124 = vmatpush.msrb.mxu2 %v1579_v0  ;;  %144 = vmatpush.msrb.mxu3 %v1584_v1  ;;  %v156_v13 = vrot.slane %v1591_v2, 2  ;;  %v157_v14 = vrot.slane %v1596_v3, 1  ;;  %v1631_v16 = vld [vmem:[#allocation3 + $0x1e0] sm:$0xff]  ;;  %v1635_v17 = vld [vmem:[#allocation3 + $0xd0] sm:$0xff]  ;;  %v208_v22 = vrot.slane %v1591_v2, 3  ;;  %v209_v23 = vrot.slane %v1596_v3, 2 }
   0xa   :  { %v54_v5 = vsel %vm53_vm0, %v52_v4, %v1591_v2  ;;  %384 = vmatpush.msrb.mxu0 %v1579_v0  ;;  %404 = vmatpush.msrb.mxu1 %v1584_v1  ;;  %v106_v9 = vsel %vm53_vm0, %v1596_v3, %v105_v6  ;;  %v262_v10 = vsel %vm53_vm0, %v261_v8, %v260_v7  ;;  %v1637_v18 = vld [vmem:[#allocation3 + $0x1d0] sm:$0xff]  ;;  %v1644_v20 = vld [vmem:[#allocation3 + $0xc0] sm:$0xff]  ;;  %v312_v31 = vrot.slane %v1591_v2, 5  ;;  %v1695_v41 = vld [vmem:[#allocation3 + $0xf8] sm:$0xff]  ;;  %s1367_s20 = sshll.u32 %s1537_s19, 4  ;;  %s1368_s20 = int_to_ptr.vmem [resolvable:$true] %s1367_s20 }
   0xb   :  { %1379 = vmatmul.msk.f32.vlgmr.msra.gmra.mxu2 %vm55_vm1, %v54_v5  ;;  %1380 = vmatmul.msk.f32.vlgmr.msra.gmra.mxu3 %vm55_vm1, %v54_v5  ;;  %2605 = vst [vmem:[#allocation9_spill] sm:$0xff] %v1635_v17  ;;  %v158_v19 = vsel %vm53_vm0, %v157_v14, %v156_v13  ;;  %v1646_v21 = vld [vmem:[#allocation3 + $0x1c0] sm:$0xff]  ;;  %v1654_v24 = vld [vmem:[#allocation3 + $0xb0] sm:$0xff]  ;;  %v210_v28 = vsel %vm53_vm0, %v209_v23, %v208_v22  ;;  %v313_v32 = vrot.slane %v1596_v3, 4  ;;  %v364_v37 = vrot.slane %v1591_v2, 6  ;;  %v1697_v42 = vld [vmem:[#allocation3 + $0x1f8] sm:$0xff] }
   0xc   :  { %176 = vmatpush.msra.mxu2 %v1579_v0  ;;  %196 = vmatpush.msra.mxu3 %v1584_v1  ;;  %v1656_v25 = vld [vmem:[#allocation3 + $0x1b0] sm:$0xff]  ;;  %v1660_v26 = vld [vmem:[#allocation3 + $0xa0] sm:$0xff]  ;;  %v365_v38 = vrot.slane %v1596_v3, 5  ;;  %v1709_v45 = vld [vmem:[#allocation3 + $0xe8] sm:$0xff]  ;;  %v416_v47 = vrot.slane %v1591_v2, 7  ;;  %v417_v48 = vrot.slane %v1596_v3, 6 }
   0xd   :  { %1388 = vmatmul.msk.f32.vlgmr.msra.gmra.mxu1 %vm55_vm1, %v262_v10  ;;  %1387 = vmatmul.msk.f32.vlgmr.msra.gmra.mxu0 %vm55_vm1, %v262_v10  ;;  %v1662_v27 = vld [vmem:[#allocation3 + $0x1a0] sm:$0xff]  ;;  %v1669_v29 = vld [vmem:[#allocation3 + $0x90] sm:$0xff]  ;;  %v314_v39 = vsel %vm53_vm0, %v313_v32, %v312_v31  ;;  %v1711_v46 = vld [vmem:[#allocation3 + $0x1e8] sm:$0xff]  ;;  %vm1360_vm3 = vcmask 17408  }
   0xe   :  { %533 = vmatpush.msra.mxu0 %v1619_v11  ;;  %553 = vmatpush.msra.mxu1 %v1621_v12  ;;  %v1671_v30 = vld [vmem:[#allocation3 + $0x190] sm:$0xff]  ;;  %v1679_v33 = vld [vmem:[#allocation3 + $0x80] sm:$0xff]  ;;  %v366_v40 = vsel %vm53_vm0, %v365_v38, %v364_v37  ;;  %v1721_v51 = vld [vmem:[#allocation3 + $0xd8] sm:$0xff]  ;;  %v418_v57 = vsel %vm53_vm0, %v417_v48, %v416_v47 }
   0xf   :  { %v1681_v34 = vld [vmem:[#allocation3 + $0x180] sm:$0xff]  ;;  %v1685_v35 = vld [vmem:[#allocation3 + $0x70] sm:$0xff]  ;;  %v1723_v52 = vld [vmem:[#allocation3 + $0x1d8] sm:$0xff] }
  0x10   :  { %534 = vmatpush.msra.mxu0 %v1629_v15  ;;  %554 = vmatpush.msra.mxu1 %v1631_v16  ;;  %v1687_v36 = vld [vmem:[#allocation3 + $0x170] sm:$0xff]  ;;  %v1701_v43 = vld [vmem:[#allocation3 + $0x60] sm:$0xff]  ;;  %v1733_v55 = vld [vmem:[#allocation3 + $0xc8] sm:$0xff] }
  0x11   :  { %v1703_v44 = vld [vmem:[#allocation3 + $0x160] sm:$0xff]  ;;  %v1717_v49 = vld [vmem:[#allocation3 + $0x50] sm:$0xff]  ;;  %v1735_v56 = vld [vmem:[#allocation3 + $0x1c8] sm:$0xff] }
  0x12   :  { %535 = vmatpush.msra.mxu0 %v1635_v17  ;;  %555 = vmatpush.msra.mxu1 %v1637_v18  ;;  %v1719_v50 = vld [vmem:[#allocation3 + $0x150] sm:$0xff]  ;;  %v1729_v53 = vld [vmem:[#allocation3 + $0x40] sm:$0xff]  ;;  %v1742_v58 = vld [vmem:[#allocation3 + $0xb8] sm:$0xff] }
  0x13   :  { %1381 = vmatmul.msk.f32.vlgmr.msrb.gmra.mxu2 %vm55_vm1, %v106_v9  ;;  %1382 = vmatmul.msk.f32.vlgmr.msrb.gmra.mxu3 %vm55_vm1, %v106_v9  ;;  %2606 = vst [vmem:[#allocation10_spill] sm:$0xff] %v1729_v53  ;;  %v1731_v54 = vld [vmem:[#allocation3 + $0x140] sm:$0xff]  ;;  %v1744_v59 = vld [vmem:[#allocation3 + $0x1b8] sm:$0xff]  ;;  %v1750_v60 = vld [vmem:[#allocation3 + $0x30] sm:$0xff] }
  0x14   :  { %228 = vmatpush.msrb.mxu2 %v1579_v0  ;;  %248 = vmatpush.msrb.mxu3 %v1584_v1  ;;  %2607 = vst [vmem:[#allocation11_spill] sm:$0xff] %v1731_v54  ;;  %v1752_v61 = vld [vmem:[#allocation3 + $0x130] sm:$0xff]  ;;  %v1754_v62 = vld [vmem:[#allocation3 + $0xa8] sm:$0xff]  ;;  %v1766_v2 = vld [vmem:[#allocation3 + $0x98] sm:$0xff] }
  0x15   :  { %536 = vmatpush.msra.mxu0 %v1644_v20  ;;  %556 = vmatpush.msra.mxu1 %v1646_v21  ;;  %2608 = vst [vmem:[#allocation12_spill] sm:$0xff] %v1750_v60  ;;  %v1756_v63 = vld [vmem:[#allocation3 + $0x1a8] sm:$0xff]  ;;  %v1768_v3 = vld [vmem:[#allocation3 + $0x198] sm:$0xff]  ;;  %v1774_v4 = vld [vmem:[#allocation3 + $0x10] sm:$0xff] }
  0x16   :  { %1392 = vmatmul.msk.f32.vlgmr.msrb.gmra.mxu1 %vm55_vm1, %v366_v40  ;;  %1391 = vmatmul.msk.f32.vlgmr.msrb.gmra.mxu0 %vm55_vm1, %v366_v40  ;;  %2609 = vst [vmem:[#allocation13_spill] sm:$0xff] %v1752_v61  ;;  %v1776_v5 = vld [vmem:[#allocation3 + $0x110] sm:$0xff]  ;;  %v1778_v6 = vld [vmem:[#allocation3 + $0x88] sm:$0xff]  ;;  %v1786_v8 = vld [vmem:[#allocation3] sm:$0xff] }
  0x17   :  { %537 = vmatpush.msra.mxu0 %v1654_v24  ;;  %557 = vmatpush.msra.mxu1 %v1656_v25  ;;  %2612 = vst [vmem:[#allocation16_spill] sm:$0xff] %v1774_v4  ;;  %v1780_v7 = vld [vmem:[#allocation3 + $0x188] sm:$0xff]  ;;  %v1788_v9 = vld [vmem:[#allocation3 + $0x100] sm:$0xff]  ;;  %v1790_v10 = vld [vmem:[#allocation3 + $0x78] sm:$0xff] }
  0x18   :  { %2613 = vst [vmem:[#allocation17_spill] sm:$0xff] %v1776_v5  ;;  %v1792_v13 = vld [vmem:[#allocation3 + $0x178] sm:$0xff]  ;;  %v1798_v14 = vld [vmem:[#allocation3 + $0x68] sm:$0xff] }
  0x19   :  { %538 = vmatpush.msra.mxu0 %v1660_v26  ;;  %558 = vmatpush.msra.mxu1 %v1662_v27  ;;  %2614 = vst [vmem:[#allocation18_spill] sm:$0xff] %v1786_v8  ;;  %v1806_v22 = vld [vmem:[#allocation3 + $0x58] sm:$0xff]  ;;  %v1812_v31 = vld [vmem:[#allocation3 + $0x48] sm:$0xff] }
  0x1a   :  { %2615 = vst [vmem:[#allocation19_spill] sm:$0xff] %v1788_v9  ;;  %v1808_v23 = vld [vmem:[#allocation3 + $0x158] sm:$0xff]  ;;  %v1814_v32 = vld [vmem:[#allocation3 + $0x148] sm:$0xff] }
  0x1b   :  { %1383 = vmatmul.msk.f32.vlgmr.msra.gmra.mxu2 %vm55_vm1, %v158_v19  ;;  %1384 = vmatmul.msk.f32.vlgmr.msra.gmra.mxu3 %vm55_vm1, %v158_v19  ;;  %v1800_v19 = vld [vmem:[#allocation3 + $0x168] sm:$0xff]  ;;  %2616 = vst [vmem:[#allocation20_spill] sm:$0xff] %v1808_v23  ;;  %v1820_v37 = vld [vmem:[#allocation3 + $0x38] sm:$0xff] }
  0x1c   :  { %332 = vmatpush.msra.mxu2 %v1579_v0  ;;  %352 = vmatpush.msra.mxu3 %v1584_v1  ;;  %2617 = vst [vmem:[#allocation21_spill] sm:$0xff] %v1812_v31  ;;  %v1822_v38 = vld [vmem:[#allocation3 + $0x138] sm:$0xff]  ;;  %v1830_v40 = vld [vmem:[#allocation3 + $0x128] sm:$0xff] }
  0x1d   :  { %539 = vmatpush.msra.mxu0 %v1669_v29  ;;  %559 = vmatpush.msra.mxu1 %v1671_v30  ;;  %2618 = vst [vmem:[#allocation22_spill] sm:$0xff] %v1814_v32  ;;  %v1836_v47 = vld [vmem:[#allocation3 + $0x18] sm:$0xff] }
  0x1e   :  { %2619 = vst [vmem:[#allocation23_spill] sm:$0xff] %v1820_v37  ;;  %v1838_v48 = vld [vmem:[#allocation3 + $0x118] sm:$0xff] }
  0x1f   :  { %540 = vmatpush.msra.mxu0 %v1679_v33  ;;  %560 = vmatpush.msra.mxu1 %v1681_v34  ;;  %2620 = vst [vmem:[#allocation24_spill] sm:$0xff] %v1822_v38 }
  0x20   :  { %2622 = vst [vmem:[#allocation26_spill] sm:$0xff] %v1830_v40 }
  0x21   :  { %541 = vmatpush.msra.mxu0 %v1685_v35  ;;  %561 = vmatpush.msra.mxu1 %v1687_v36  ;;  %2623 = vst [vmem:[#allocation27_spill] sm:$0xff] %v1836_v47 }
  0x22   :  { %2624 = vst [vmem:[#allocation28_spill] sm:$0xff] %v1838_v48 }
  0x23   :  { %1385 = vmatmul.msk.f32.vlgmr.msrb.gmra.mxu2 %vm55_vm1, %v210_v28  ;;  %1386 = vmatmul.msk.f32.vlgmr.msrb.gmra.mxu3 %vm55_vm1, %v210_v28  ;;  %v1536_v28 = vmov 0.0  }
  0x24   :  { %436 = vmatpush.msrb.mxu2 %v1579_v0  ;;  %456 = vmatpush.msrb.mxu3 %v1584_v1  ;;  %v1762_v0 = vld [vmem:[#allocation3 + $0x20] sm:$0xff] }
  0x25   :  { %542 = vmatpush.msra.mxu0 %v1701_v43  ;;  %562 = vmatpush.msra.mxu1 %v1703_v44  ;;  %2610 = vst [vmem:[#allocation14_spill] sm:$0xff] %v1762_v0  ;;  %v1764_v1 = vld [vmem:[#allocation3 + $0x120] sm:$0xff] }
  0x26   :  { %2611 = vst [vmem:[#allocation15_spill] sm:$0xff] %v1764_v1 }
  0x27   :  { %543 = vmatpush.msra.mxu0 %v1717_v49  ;;  %563 = vmatpush.msra.mxu1 %v1719_v50 }
  0x29   :  { %544 = vmatpush.msra.mxu0 %v1729_v53  ;;  %564 = vmatpush.msra.mxu1 %v1731_v54 }
  0x2b   :  { %1389 = vmatmul.msk.f32.vlgmr.msra.gmra.mxu2 %vm55_vm1, %v314_v39  ;;  %1390 = vmatmul.msk.f32.vlgmr.msra.gmra.mxu3 %vm55_vm1, %v314_v39  ;;  %v1828_v39 = vld [vmem:[#allocation3 + $0x28] sm:$0xff] }
  0x2c   :  { %573 = vmatpush.msra.mxu2 %v1695_v41  ;;  %593 = vmatpush.msra.mxu3 %v1697_v42  ;;  %2621 = vst [vmem:[#allocation25_spill] sm:$0xff] %v1828_v39 }
  0x2d   :  { %545 = vmatpush.msra.mxu0 %v1750_v60  ;;  %565 = vmatpush.msra.mxu1 %v1752_v61 }
  0x2e   :  { %574 = vmatpush.msra.mxu2 %v1709_v45  ;;  %594 = vmatpush.msra.mxu3 %v1711_v46 }
  0x2f   :  { %546 = vmatpush.msra.mxu0 %v1762_v0  ;;  %566 = vmatpush.msra.mxu1 %v1764_v1 }
  0x30   :  { %575 = vmatpush.msra.mxu2 %v1721_v51  ;;  %595 = vmatpush.msra.mxu3 %v1723_v52 }
  0x31   :  { %547 = vmatpush.msra.mxu0 %v1774_v4  ;;  %567 = vmatpush.msra.mxu1 %v1776_v5 }
  0x32   :  { %576 = vmatpush.msra.mxu2 %v1733_v55  ;;  %596 = vmatpush.msra.mxu3 %v1735_v56 }
  0x33   :  { %1394 = vmatmul.msk.f32.vlgmr.msrb.gmra.mxu3 %vm55_vm1, %v418_v57  ;;  %1393 = vmatmul.msk.f32.vlgmr.msrb.gmra.mxu2 %vm55_vm1, %v418_v57  ;;  %v1844_v57 = vld [vmem:[#allocation3 + $0x8] sm:$0xff] }
  0x34   :  { %577 = vmatpush.msra.mxu2 %v1742_v58  ;;  %597 = vmatpush.msra.mxu3 %v1744_v59  ;;  %2625 = vst [vmem:[#allocation29_spill] sm:$0xff] %v1844_v57 }
  0x35   :  { %548 = vmatpush.msra.mxu0 %v1786_v8  ;;  %568 = vmatpush.msra.mxu1 %v1788_v9 }
  0x36   :  { %578 = vmatpush.msra.mxu2 %v1754_v62  ;;  %598 = vmatpush.msra.mxu3 %v1756_v63 }
  0x37   :  { %549 = vmatmul.f32.vlgmr.msra.gmra.mxu0 %v1536_v28  ;;  %569 = vmatmul.f32.vlgmr.msra.gmra.mxu1 %v1536_v28 }
  0x38   :  { %579 = vmatpush.msra.mxu2 %v1766_v2  ;;  %599 = vmatpush.msra.mxu3 %v1768_v3 }
  0x39   :  { %627 = vmatpush.msrb.mxu0 %v1619_v11  ;;  %647 = vmatpush.msrb.mxu1 %v1621_v12 }
  0x3a   :  { %580 = vmatpush.msra.mxu2 %v1778_v6  ;;  %600 = vmatpush.msra.mxu3 %v1780_v7 }
  0x3b   :  { %628 = vmatpush.msrb.mxu0 %v1629_v15  ;;  %648 = vmatpush.msrb.mxu1 %v1631_v16 }
  0x3c   :  { %581 = vmatpush.msra.mxu2 %v1790_v10  ;;  %601 = vmatpush.msra.mxu3 %v1792_v13 }
  0x3d   :  { %629 = vmatpush.msrb.mxu0 %v1635_v17  ;;  %649 = vmatpush.msrb.mxu1 %v1637_v18  ;;  %v1846_v17 = vld [vmem:[#allocation3 + $0x108] sm:$0xff] }
  0x3e   :  { %582 = vmatpush.msra.mxu2 %v1798_v14  ;;  %602 = vmatpush.msra.mxu3 %v1800_v19  ;;  %2626 = vst [vmem:[#allocation30_spill] sm:$0xff] %v1846_v17 }
  0x3f   :  { %630 = vmatpush.msrb.mxu0 %v1644_v20  ;;  %650 = vmatpush.msrb.mxu1 %v1646_v21 }
  0x40   :  { %583 = vmatpush.msra.mxu2 %v1806_v22  ;;  %603 = vmatpush.msra.mxu3 %v1808_v23 }
  0x41   :  { %631 = vmatpush.msrb.mxu0 %v1654_v24  ;;  %651 = vmatpush.msrb.mxu1 %v1656_v25 }
  0x42   :  { %584 = vmatpush.msra.mxu2 %v1812_v31  ;;  %604 = vmatpush.msra.mxu3 %v1814_v32 }
  0x43   :  { %632 = vmatpush.msrb.mxu0 %v1660_v26  ;;  %652 = vmatpush.msrb.mxu1 %v1662_v27 }
  0x44   :  { %585 = vmatpush.msra.mxu2 %v1820_v37  ;;  %605 = vmatpush.msra.mxu3 %v1822_v38 }
  0x45   :  { %633 = vmatpush.msrb.mxu0 %v1669_v29  ;;  %653 = vmatpush.msrb.mxu1 %v1671_v30 }
  0x46   :  { %586 = vmatpush.msra.mxu2 %v1828_v39  ;;  %606 = vmatpush.msra.mxu3 %v1830_v40 }
  0x47   :  { %634 = vmatpush.msrb.mxu0 %v1679_v33  ;;  %654 = vmatpush.msrb.mxu1 %v1681_v34 }
  0x48   :  { %587 = vmatpush.msra.mxu2 %v1836_v47  ;;  %607 = vmatpush.msra.mxu3 %v1838_v48 }
  0x49   :  { %635 = vmatpush.msrb.mxu0 %v1685_v35  ;;  %655 = vmatpush.msrb.mxu1 %v1687_v36 }
  0x4a   :  { %588 = vmatpush.msra.mxu2 %v1844_v57  ;;  %608 = vmatpush.msra.mxu3 %v1846_v17 }
  0x4b   :  { %589 = vmatmul.f32.vlgmr.msra.gmra.mxu2 %v1536_v28  ;;  %609 = vmatmul.f32.vlgmr.msra.gmra.mxu3 %v1536_v28  ;;  %v2627_v28 = vld [vmem:[#allocation9_spill] sm:$0xff] }
  0x4c   :  { %667 = vmatpush.msrb.mxu2 %v1695_v41  ;;  %687 = vmatpush.msrb.mxu3 %v1697_v42 }
  0x4d   :  { %636 = vmatpush.msrb.mxu0 %v1701_v43  ;;  %656 = vmatpush.msrb.mxu1 %v1703_v44 }
  0x4e   :  { %668 = vmatpush.msrb.mxu2 %v1709_v45  ;;  %688 = vmatpush.msrb.mxu3 %v1711_v46 }
  0x4f   :  { %637 = vmatpush.msrb.mxu0 %v1717_v49  ;;  %657 = vmatpush.msrb.mxu1 %v1719_v50 }
  0x50   :  { %669 = vmatpush.msrb.mxu2 %v1721_v51  ;;  %689 = vmatpush.msrb.mxu3 %v1723_v52 }
  0x51   :  { %638 = vmatpush.msrb.mxu0 %v1729_v53  ;;  %658 = vmatpush.msrb.mxu1 %v1731_v54 }
  0x52   :  { %670 = vmatpush.msrb.mxu2 %v1733_v55  ;;  %690 = vmatpush.msrb.mxu3 %v1735_v56 }
  0x53   :  { %639 = vmatpush.msrb.mxu0 %v1750_v60  ;;  %659 = vmatpush.msrb.mxu1 %v1752_v61 }
  0x54   :  { %671 = vmatpush.msrb.mxu2 %v1742_v58  ;;  %691 = vmatpush.msrb.mxu3 %v1744_v59 }
  0x55   :  { %640 = vmatpush.msrb.mxu0 %v1762_v0  ;;  %660 = vmatpush.msrb.mxu1 %v1764_v1 }
  0x56   :  { %672 = vmatpush.msrb.mxu2 %v1754_v62  ;;  %692 = vmatpush.msrb.mxu3 %v1756_v63 }
  0x57   :  { %641 = vmatpush.msrb.mxu0 %v1774_v4  ;;  %661 = vmatpush.msrb.mxu1 %v1776_v5 }
  0x58   :  { %673 = vmatpush.msrb.mxu2 %v1766_v2  ;;  %693 = vmatpush.msrb.mxu3 %v1768_v3 }
  0x59   :  { %642 = vmatpush.msrb.mxu0 %v1786_v8  ;;  %662 = vmatpush.msrb.mxu1 %v1788_v9 }
  0x5a   :  { %674 = vmatpush.msrb.mxu2 %v1778_v6  ;;  %694 = vmatpush.msrb.mxu3 %v1780_v7 }
  0x5b   :  { %721 = vmatpush.msra.mxu0 %v1619_v11  ;;  %741 = vmatpush.msra.mxu1 %v1621_v12 }
  0x5c   :  { %675 = vmatpush.msrb.mxu2 %v1790_v10  ;;  %695 = vmatpush.msrb.mxu3 %v1792_v13 }
  0x5d   :  { %722 = vmatpush.msra.mxu0 %v1629_v15  ;;  %742 = vmatpush.msra.mxu1 %v1631_v16 }
  0x5e   :  { %676 = vmatpush.msrb.mxu2 %v1798_v14  ;;  %696 = vmatpush.msrb.mxu3 %v1800_v19 }
  0x5f   :  { %723 = vmatpush.msra.mxu0 %v2627_v28  ;;  %743 = vmatpush.msra.mxu1 %v1637_v18 }
  0x60   :  { %677 = vmatpush.msrb.mxu2 %v1806_v22  ;;  %697 = vmatpush.msrb.mxu3 %v1808_v23 }
  0x61   :  { %724 = vmatpush.msra.mxu0 %v1644_v20  ;;  %744 = vmatpush.msra.mxu1 %v1646_v21 }
  0x62   :  { %678 = vmatpush.msrb.mxu2 %v1812_v31  ;;  %698 = vmatpush.msrb.mxu3 %v1814_v32 }
  0x63   :  { %725 = vmatpush.msra.mxu0 %v1654_v24  ;;  %745 = vmatpush.msra.mxu1 %v1656_v25 }
  0x64   :  { %679 = vmatpush.msrb.mxu2 %v1820_v37  ;;  %699 = vmatpush.msrb.mxu3 %v1822_v38 }
  0x65   :  { %726 = vmatpush.msra.mxu0 %v1660_v26  ;;  %746 = vmatpush.msra.mxu1 %v1662_v27 }
  0x66   :  { %680 = vmatpush.msrb.mxu2 %v1828_v39  ;;  %700 = vmatpush.msrb.mxu3 %v1830_v40 }
  0x67   :  { %727 = vmatpush.msra.mxu0 %v1669_v29  ;;  %747 = vmatpush.msra.mxu1 %v1671_v30 }
  0x68   :  { %681 = vmatpush.msrb.mxu2 %v1836_v47  ;;  %701 = vmatpush.msrb.mxu3 %v1838_v48 }
  0x69   :  { %728 = vmatpush.msra.mxu0 %v1679_v33  ;;  %748 = vmatpush.msra.mxu1 %v1681_v34 }
  0x6a   :  { %682 = vmatpush.msrb.mxu2 %v1844_v57  ;;  %702 = vmatpush.msrb.mxu3 %v1846_v17 }
  0x6b   :  { %729 = vmatpush.msra.mxu0 %v1685_v35  ;;  %749 = vmatpush.msra.mxu1 %v1687_v36 }
  0x6c   :  { %761 = vmatpush.msra.mxu2 %v1695_v41  ;;  %781 = vmatpush.msra.mxu3 %v1697_v42 }
  0x6d   :  { %730 = vmatpush.msra.mxu0 %v1701_v43  ;;  %750 = vmatpush.msra.mxu1 %v1703_v44 }
  0x6e   :  { %762 = vmatpush.msra.mxu2 %v1709_v45  ;;  %782 = vmatpush.msra.mxu3 %v1711_v46 }
  0x6f   :  { %731 = vmatpush.msra.mxu0 %v1717_v49  ;;  %751 = vmatpush.msra.mxu1 %v1719_v50 }
  0x70   :  { %763 = vmatpush.msra.mxu2 %v1721_v51  ;;  %783 = vmatpush.msra.mxu3 %v1723_v52 }
  0x71   :  { %732 = vmatpush.msra.mxu0 %v1729_v53  ;;  %752 = vmatpush.msra.mxu1 %v1731_v54 }
  0x72   :  { %764 = vmatpush.msra.mxu2 %v1733_v55  ;;  %784 = vmatpush.msra.mxu3 %v1735_v56 }
  0x73   :  { %733 = vmatpush.msra.mxu0 %v1750_v60  ;;  %753 = vmatpush.msra.mxu1 %v1752_v61 }
  0x74   :  { %765 = vmatpush.msra.mxu2 %v1742_v58  ;;  %785 = vmatpush.msra.mxu3 %v1744_v59 }
  0x75   :  { %734 = vmatpush.msra.mxu0 %v1762_v0  ;;  %754 = vmatpush.msra.mxu1 %v1764_v1 }
  0x76   :  { %766 = vmatpush.msra.mxu2 %v1754_v62  ;;  %786 = vmatpush.msra.mxu3 %v1756_v63 }
  0x77   :  { %735 = vmatpush.msra.mxu0 %v1774_v4  ;;  %755 = vmatpush.msra.mxu1 %v1776_v5 }
  0x78   :  { %767 = vmatpush.msra.mxu2 %v1766_v2  ;;  %787 = vmatpush.msra.mxu3 %v1768_v3 }
  0x79   :  { %736 = vmatpush.msra.mxu0 %v1786_v8  ;;  %756 = vmatpush.msra.mxu1 %v1788_v9  ;;  %v44_v9 = vld [vmem:[%s2544_s3] sm:$0x3] }
  0x7a   :  { %768 = vmatpush.msra.mxu2 %v1778_v6  ;;  %788 = vmatpush.msra.mxu3 %v1780_v7  ;;  %v47_v8 = vperm.slane %v44_v9, 1  ;;  %v46_v5 = vperm.slane %v44_v9, 0 }
  0x7c   :  { %769 = vmatpush.msra.mxu2 %v1790_v10  ;;  %789 = vmatpush.msra.mxu3 %v1792_v13 }
  0x7e   :  { %770 = vmatpush.msra.mxu2 %v1798_v14  ;;  %790 = vmatpush.msra.mxu3 %v1800_v19 }
  0x80   :  { %771 = vmatpush.msra.mxu2 %v1806_v22  ;;  %791 = vmatpush.msra.mxu3 %v1808_v23 }
  0x82   :  { %772 = vmatpush.msra.mxu2 %v1812_v31  ;;  %792 = vmatpush.msra.mxu3 %v1814_v32 }
  0x84   :  { %773 = vmatpush.msra.mxu2 %v1820_v37  ;;  %793 = vmatpush.msra.mxu3 %v1822_v38 }
  0x86   :  { %774 = vmatpush.msra.mxu2 %v1828_v39  ;;  %794 = vmatpush.msra.mxu3 %v1830_v40 }
  0x88   :  { %775 = vmatpush.msra.mxu2 %v1836_v47  ;;  %795 = vmatpush.msra.mxu3 %v1838_v48 }
  0x8a   :  { %776 = vmatpush.msra.mxu2 %v1844_v57  ;;  %796 = vmatpush.msra.mxu3 %v1846_v17  ;;  %v302_v39 = vpop.f32.mrf.mxu1  ;;  %v282_v37 = vpop.f32.mrf.mxu0 }
  0x8b   :  { %v303_v40 = vadd.f32 %v302_v39, %v47_v8  ;;  %v283_v61 = vadd.f32 %v282_v37, %v46_v5 }
  0x8d   :  { %v307_v48 = vrot.slane %v303_v40, 6 }
  0x8e   :  { %v75_v4 = vpop.f32.mrf.mxu2  ;;  %v95_v1 = vpop.f32.mrf.mxu3 }
  0x8f   :  { %v96_v0 = vadd.f32 %v95_v1, %v47_v8  ;;  %v76_v38 = vadd.f32 %v75_v4, %v46_v5  ;;  %v308_v57 = vsel %vm101_vm2, %v283_v61, %v307_v48 }
  0x90   :  { %311 = vst [vmem:[#allocation2 + $0x10] sm:$0xf] %v308_v57 }
  0x91   :  { %v100_v47 = vrot.slane %v96_v0, 6 }
  0x93   :  { %v102_v60 = vsel %vm101_vm2, %v76_v38, %v100_v47  ;;  %v406_v47 = vpop.f32.mrf.mxu1  ;;  %v386_v48 = vpop.f32.mrf.mxu0 }
  0x94   :  { %104 = vst [vmem:[#allocation2] sm:$0xf] %v102_v60  ;;  %v407_v57 = vadd.f32 %v406_v47, %v47_v8 }
  0x96   :  { %v126_v17 = vpop.f32.mrf.mxu2  ;;  %v146_v32 = vpop.f32.mrf.mxu3  ;;  %v411_v23 = vrot.slane %v407_v57, 6 }
  0x97   :  { %v147_v9 = vadd.f32 %v146_v32, %v47_v8  ;;  %v127_v31 = vadd.f32 %v126_v17, %v46_v5  ;;  %v387_v32 = vadd.f32 %v386_v48, %v46_v5 }
  0x99   :  { %v151_v54 = vrot.slane %v147_v9, 6 }
  0x9b   :  { %v152_v1 = vsel %vm101_vm2, %v127_v31, %v151_v54  ;;  %v412_v31 = vsel %vm101_vm2, %v387_v32, %v411_v23 }
  0x9c   :  { %155 = vst [vmem:[#allocation2 + $0x4] sm:$0xf] %v152_v1 }
  0x9d   :  { %415 = vst [vmem:[#allocation2 + $0x18] sm:$0xf] %v412_v31 }
  0x9e   :  { %v178_v39 = vpop.f32.mrf.mxu2  ;;  %v198_v4 = vpop.f32.mrf.mxu3 }
  0x9f   :  { %v199_v0 = vadd.f32 %v198_v4, %v47_v8  ;;  %v179_v53 = vadd.f32 %v178_v39, %v46_v5 }
  0xa1   :  { %v203_v40 = vrot.slane %v199_v0, 6 }
  0xa3   :  { %v204_v37 = vsel %vm101_vm2, %v179_v53, %v203_v40 }
  0xa4   :  { %207 = vst [vmem:[#allocation2 + $0x8] sm:$0xf] %v204_v37 }
  0xa6   :  { %v230_v60 = vpop.f32.mrf.mxu2  ;;  %v250_v38 = vpop.f32.mrf.mxu3 }
  0xa7   :  { %v251_v61 = vadd.f32 %v250_v38, %v47_v8  ;;  %v231_v17 = vadd.f32 %v230_v60, %v46_v5 }
  0xa9   :  { %v255_v9 = vrot.slane %v251_v61, 6 }
  0xab   :  { %v256_v54 = vsel %vm101_vm2, %v231_v17, %v255_v9 }
  0xac   :  { %259 = vst [vmem:[#allocation2 + $0xc] sm:$0xf] %v256_v54 }
  0xae   :  { %v334_v1 = vpop.f32.mrf.mxu2  ;;  %v354_v39 = vpop.f32.mrf.mxu3 }
  0xaf   :  { %v355_v53 = vadd.f32 %v354_v39, %v47_v8  ;;  %v335_v4 = vadd.f32 %v334_v1, %v46_v5  ;;  %v468_v1 = vld [vmem:[#allocation2] sm:$0xf] }
  0xb1   :  { %v359_v0 = vrot.slane %v355_v53, 6 }
  0xb3   :  { %v360_v40 = vsel %vm101_vm2, %v335_v4, %v359_v0  ;;  %v2628_v0 = vld [vmem:[#allocation20_spill] sm:$0xff] }
  0xb4   :  { %363 = vst [vmem:[#allocation2 + $0x14] sm:$0xf] %v360_v40  ;;  %v550_v57 = vpop.f32.mrf.mxu0  ;;  %v570_v17 = vpop.f32.mrf.mxu1  ;;  %v2629_v40 = vld [vmem:[#allocation10_spill] sm:$0xff] }
  0xb5   :  { %v571_v54 = vadd.f32 %v570_v17, %v550_v57  ;;  %v2636_v57 = vld [vmem:[#allocation24_spill] sm:$0xff]  ;;  %v2637_v17 = vld [vmem:[#allocation14_spill] sm:$0xff] }
  0xb6   :  { %v458_v37 = vpop.f32.mrf.mxu3  ;;  %v438_v38 = vpop.f32.mrf.mxu2 }
  0xb7   :  { %v459_v47 = vadd.f32 %v458_v37, %v47_v8  ;;  %v439_v60 = vadd.f32 %v438_v38, %v46_v5  ;;  %v2630_v37 = vld [vmem:[#allocation11_spill] sm:$0xff]  ;;  %v2631_v38 = vld [vmem:[#allocation21_spill] sm:$0xff] }
  0xb9   :  { %v463_v61 = vrot.slane %v459_v47, 6  ;;  %v2632_v47 = vld [vmem:[#allocation22_spill] sm:$0xff] }
  0xbb   :  { %v464_v48 = vsel %vm101_vm2, %v439_v60, %v463_v61  ;;  %v2633_v60 = vld [vmem:[#allocation12_spill] sm:$0xff]  ;;  %v2634_v61 = vld [vmem:[#allocation13_spill] sm:$0xff] }
  0xbc   :  { %467 = vst [vmem:[#allocation2 + $0x1c] sm:$0xf] %v464_v48  ;;  %v2635_v48 = vld [vmem:[#allocation23_spill] sm:$0xff] }
  0xce   :  { %v590_v23 = vpop.f32.mrf.mxu2  ;;  %v610_v32 = vpop.f32.mrf.mxu3 }
  0xcf   :  { %v611_v9 = vadd.f32 %v610_v32, %v590_v23  ;;  %v2638_v23 = vld [vmem:[#allocation15_spill] sm:$0xff]  ;;  %v2639_v32 = vld [vmem:[#allocation25_spill] sm:$0xff] }
  0xd1   :  { %v615_v31 = vrot.slane %v611_v9, 6  ;;  %v2640_v9 = vld [vmem:[#allocation26_spill] sm:$0xff] }
  0xd3   :  { %v616_v39 = vsel %vm101_vm2, %v571_v54, %v615_v31  ;;  %v2641_v54 = vld [vmem:[#allocation16_spill] sm:$0xff]  ;;  %v2642_v31 = vld [vmem:[#allocation17_spill] sm:$0xff] }
  0xd4   :  { %v618_v53 = vadd.f32 %v616_v39, %v468_v1  ;;  %v2643_v1 = vld [vmem:[#allocation27_spill] sm:$0xff]  ;;  %v2644_v39 = vld [vmem:[#allocation28_spill] sm:$0xff] }
  0xd6   :  { %1401 = vtanh.f32 %v618_v53  ;;  %v2645_v53 = vld [vmem:[#allocation18_spill] sm:$0xff] }
  0xdc   :  { %v1402_v4 = vpop.eup %1401 }
  0xdd   :  { %622 = vst [vmem:[#allocation1] ss:$4 sm:$0xff] %v1402_v4  ;;  %v2646_v4 = vld [vmem:[#allocation19_spill] sm:$0xff] }
  0xe4   :  { %v623_v8 = vld.sshfl [vmem:[#allocation1] sm:$0xff pattern:$0x73625140]  ;;  %v624_v5 = vld.sshfl [vmem:[#allocation1 + $0x8] sm:$0xff pattern:$0x73625140] }
  0xe5   :  { %643 = vmatmul.f32.vlgmr.msrb.gmra.mxu0 %v623_v8  ;;  %663 = vmatmul.f32.vlgmr.msrb.gmra.mxu1 %v624_v5 }
  0xe6   :  { %683 = vmatmul.f32.vlgmr.msrb.gmra.mxu2 %v623_v8  ;;  %703 = vmatmul.f32.vlgmr.msrb.gmra.mxu3 %v624_v5  ;;  %v2647_v8 = vld [vmem:[#allocation29_spill] sm:$0xff]  ;;  %v2648_v5 = vld [vmem:[#allocation30_spill] sm:$0xff] }
  0xe7   :  { %815 = vmatpush.msrb.mxu0 %v1619_v11  ;;  %835 = vmatpush.msrb.mxu1 %v1621_v12 }
  0xe8   :  { %855 = vmatpush.msrb.mxu2 %v1695_v41  ;;  %875 = vmatpush.msrb.mxu3 %v1697_v42 }
  0xe9   :  { %816 = vmatpush.msrb.mxu0 %v1629_v15  ;;  %836 = vmatpush.msrb.mxu1 %v1631_v16 }
  0xea   :  { %856 = vmatpush.msrb.mxu2 %v1709_v45  ;;  %876 = vmatpush.msrb.mxu3 %v1711_v46 }
  0xeb   :  { %817 = vmatpush.msrb.mxu0 %v2627_v28  ;;  %837 = vmatpush.msrb.mxu1 %v1637_v18 }
  0xec   :  { %857 = vmatpush.msrb.mxu2 %v1721_v51  ;;  %877 = vmatpush.msrb.mxu3 %v1723_v52 }
  0xed   :  { %818 = vmatpush.msrb.mxu0 %v1644_v20  ;;  %838 = vmatpush.msrb.mxu1 %v1646_v21 }
  0xee   :  { %858 = vmatpush.msrb.mxu2 %v1733_v55  ;;  %878 = vmatpush.msrb.mxu3 %v1735_v56 }
  0xef   :  { %819 = vmatpush.msrb.mxu0 %v1654_v24  ;;  %839 = vmatpush.msrb.mxu1 %v1656_v25 }
  0xf0   :  { %859 = vmatpush.msrb.mxu2 %v1742_v58  ;;  %879 = vmatpush.msrb.mxu3 %v1744_v59 }
  0xf1   :  { %820 = vmatpush.msrb.mxu0 %v1660_v26  ;;  %840 = vmatpush.msrb.mxu1 %v1662_v27 }
  0xf2   :  { %860 = vmatpush.msrb.mxu2 %v1754_v62  ;;  %880 = vmatpush.msrb.mxu3 %v1756_v63 }
  0xf3   :  { %821 = vmatpush.msrb.mxu0 %v1669_v29  ;;  %841 = vmatpush.msrb.mxu1 %v1671_v30 }
  0xf4   :  { %861 = vmatpush.msrb.mxu2 %v1766_v2  ;;  %881 = vmatpush.msrb.mxu3 %v1768_v3 }
  0xf5   :  { %822 = vmatpush.msrb.mxu0 %v1679_v33  ;;  %842 = vmatpush.msrb.mxu1 %v1681_v34 }
  0xf6   :  { %862 = vmatpush.msrb.mxu2 %v1778_v6  ;;  %882 = vmatpush.msrb.mxu3 %v1780_v7 }
  0xf7   :  { %823 = vmatpush.msrb.mxu0 %v1685_v35  ;;  %843 = vmatpush.msrb.mxu1 %v1687_v36 }
  0xf8   :  { %863 = vmatpush.msrb.mxu2 %v1790_v10  ;;  %883 = vmatpush.msrb.mxu3 %v1792_v13 }
  0xf9   :  { %824 = vmatpush.msrb.mxu0 %v1701_v43  ;;  %844 = vmatpush.msrb.mxu1 %v1703_v44 }
  0xfa   :  { %864 = vmatpush.msrb.mxu2 %v1798_v14  ;;  %884 = vmatpush.msrb.mxu3 %v1800_v19 }
  0xfb   :  { %825 = vmatpush.msrb.mxu0 %v1717_v49  ;;  %845 = vmatpush.msrb.mxu1 %v1719_v50 }
  0xfc   :  { %865 = vmatpush.msrb.mxu2 %v1806_v22  ;;  %885 = vmatpush.msrb.mxu3 %v2628_v0 }
  0xfd   :  { %826 = vmatpush.msrb.mxu0 %v2629_v40  ;;  %846 = vmatpush.msrb.mxu1 %v2630_v37 }
  0xfe   :  { %866 = vmatpush.msrb.mxu2 %v2631_v38  ;;  %886 = vmatpush.msrb.mxu3 %v2632_v47 }
  0xff   :  { %827 = vmatpush.msrb.mxu0 %v2633_v60  ;;  %847 = vmatpush.msrb.mxu1 %v2634_v61 }
 0x100   :  { %867 = vmatpush.msrb.mxu2 %v2635_v48  ;;  %887 = vmatpush.msrb.mxu3 %v2636_v57 }
 0x101   :  { %828 = vmatpush.msrb.mxu0 %v2637_v17  ;;  %848 = vmatpush.msrb.mxu1 %v2638_v23 }
 0x102   :  { %868 = vmatpush.msrb.mxu2 %v2639_v32  ;;  %888 = vmatpush.msrb.mxu3 %v2640_v9 }
 0x103   :  { %829 = vmatpush.msrb.mxu0 %v2641_v54  ;;  %849 = vmatpush.msrb.mxu1 %v2642_v31  ;;  %v620_v31 = vld [vmem:[#allocation2 + $0x4] sm:$0xf] }
 0x104   :  { %869 = vmatpush.msrb.mxu2 %v2643_v1  ;;  %889 = vmatpush.msrb.mxu3 %v2644_v39 }
 0x105   :  { %830 = vmatpush.msrb.mxu0 %v2645_v53  ;;  %850 = vmatpush.msrb.mxu1 %v2646_v4 }
 0x106   :  { %870 = vmatpush.msrb.mxu2 %v2647_v8  ;;  %890 = vmatpush.msrb.mxu3 %v2648_v5 }
 0x162   :  { %v644_v23 = vpop.f32.mrf.mxu0  ;;  %v664_v32 = vpop.f32.mrf.mxu1 }
 0x163   :  { %v665_v54 = vadd.f32 %v664_v32, %v644_v23 }
 0x169   :  { %v684_v17 = vpop.f32.mrf.mxu2  ;;  %v704_v9 = vpop.f32.mrf.mxu3 }
 0x16a   :  { %v705_v57 = vadd.f32 %v704_v9, %v684_v17  ;;  %v2114_v9 = vld [vmem:[#allocation3 + $0xf0] sm:$0xff] }
 0x16c   :  { %v709_v48 = vrot.slane %v705_v57, 6 }
 0x16e   :  { %v710_v1 = vsel %vm101_vm2, %v665_v54, %v709_v48  ;;  %v2117_v54 = vld [vmem:[#allocation3 + $0x1f0] sm:$0xff] }
 0x16f   :  { %v712_v61 = vadd.f32 %v710_v1, %v620_v31  ;;  %v2122_v31 = vld [vmem:[#allocation3 + $0xe0] sm:$0xff] }
 0x170   :  { %v2125_v1 = vld [vmem:[#allocation3 + $0x1e0] sm:$0xff] }
 0x171   :  { %1403 = vtanh.f32 %v712_v61  ;;  %v714_v61 = vld [vmem:[#allocation2 + $0x8] sm:$0xf] }
 0x177   :  { %v1404_v39 = vpop.eup %1403 }
 0x178   :  { %716 = vst [vmem:[#allocation1] ss:$4 sm:$0xff] %v1404_v39  ;;  %v2130_v39 = vld [vmem:[#allocation3 + $0xd0] sm:$0xff] }
 0x17f   :  { %v717_v53 = vld.sshfl [vmem:[#allocation1] sm:$0xff pattern:$0x73625140]  ;;  %v718_v4 = vld.sshfl [vmem:[#allocation1 + $0x8] sm:$0xff pattern:$0x73625140] }
 0x180   :  { %737 = vmatmul.f32.vlgmr.msra.gmra.mxu0 %v717_v53  ;;  %757 = vmatmul.f32.vlgmr.msra.gmra.mxu1 %v718_v4 }
 0x181   :  { %777 = vmatmul.f32.vlgmr.msra.gmra.mxu2 %v717_v53  ;;  %797 = vmatmul.f32.vlgmr.msra.gmra.mxu3 %v718_v4  ;;  %v2133_v53 = vld [vmem:[#allocation3 + $0x1d0] sm:$0xff]  ;;  %v2229_v4 = vld [vmem:[#allocation3 + $0xe8] sm:$0xff] }
 0x182   :  { %909 = vmatpush.msra.mxu0 %v1619_v11  ;;  %929 = vmatpush.msra.mxu1 %v1621_v12  ;;  %v2649_v11 = vld [vmem:[#allocation13_spill] sm:$0xff]  ;;  %v2650_v12 = vld [vmem:[#allocation23_spill] sm:$0xff] }
 0x183   :  { %949 = vmatpush.msra.mxu2 %v1695_v41  ;;  %969 = vmatpush.msra.mxu3 %v1697_v42 }
 0x184   :  { %910 = vmatpush.msra.mxu0 %v1629_v15  ;;  %930 = vmatpush.msra.mxu1 %v1631_v16  ;;  %v2651_v15 = vld [vmem:[#allocation24_spill] sm:$0xff]  ;;  %v2652_v16 = vld [vmem:[#allocation14_spill] sm:$0xff] }
 0x185   :  { %950 = vmatpush.msra.mxu2 %v1709_v45  ;;  %970 = vmatpush.msra.mxu3 %v1711_v46 }
 0x186   :  { %911 = vmatpush.msra.mxu0 %v2627_v28  ;;  %931 = vmatpush.msra.mxu1 %v1637_v18  ;;  %v2653_v18 = vld [vmem:[#allocation15_spill] sm:$0xff] }
 0x187   :  { %951 = vmatpush.msra.mxu2 %v1721_v51  ;;  %971 = vmatpush.msra.mxu3 %v1723_v52 }
 0x188   :  { %912 = vmatpush.msra.mxu0 %v1644_v20  ;;  %932 = vmatpush.msra.mxu1 %v1646_v21  ;;  %v2654_v20 = vld [vmem:[#allocation25_spill] sm:$0xff]  ;;  %v2655_v21 = vld [vmem:[#allocation26_spill] sm:$0xff] }
 0x189   :  { %952 = vmatpush.msra.mxu2 %v1733_v55  ;;  %972 = vmatpush.msra.mxu3 %v1735_v56 }
 0x18a   :  { %913 = vmatpush.msra.mxu0 %v1654_v24  ;;  %933 = vmatpush.msra.mxu1 %v1656_v25  ;;  %v2656_v24 = vld [vmem:[#allocation16_spill] sm:$0xff]  ;;  %v2657_v25 = vld [vmem:[#allocation17_spill] sm:$0xff] }
 0x18b   :  { %953 = vmatpush.msra.mxu2 %v1742_v58  ;;  %973 = vmatpush.msra.mxu3 %v1744_v59 }
 0x18c   :  { %914 = vmatpush.msra.mxu0 %v1660_v26  ;;  %934 = vmatpush.msra.mxu1 %v1662_v27  ;;  %v2658_v26 = vld [vmem:[#allocation27_spill] sm:$0xff]  ;;  %v2659_v27 = vld [vmem:[#allocation28_spill] sm:$0xff] }
 0x18d   :  { %954 = vmatpush.msra.mxu2 %v1754_v62  ;;  %974 = vmatpush.msra.mxu3 %v1756_v63 }
 0x18e   :  { %915 = vmatpush.msra.mxu0 %v1669_v29  ;;  %935 = vmatpush.msra.mxu1 %v1671_v30  ;;  %v2660_v29 = vld [vmem:[#allocation18_spill] sm:$0xff]  ;;  %v2661_v30 = vld [vmem:[#allocation19_spill] sm:$0xff] }
 0x18f   :  { %955 = vmatpush.msra.mxu2 %v1766_v2  ;;  %975 = vmatpush.msra.mxu3 %v1768_v3 }
 0x190   :  { %916 = vmatpush.msra.mxu0 %v1679_v33  ;;  %936 = vmatpush.msra.mxu1 %v1681_v34 }
 0x191   :  { %956 = vmatpush.msra.mxu2 %v1778_v6  ;;  %976 = vmatpush.msra.mxu3 %v1780_v7 }
 0x192   :  { %917 = vmatpush.msra.mxu0 %v1685_v35  ;;  %937 = vmatpush.msra.mxu1 %v1687_v36 }
 0x193   :  { %957 = vmatpush.msra.mxu2 %v1790_v10  ;;  %977 = vmatpush.msra.mxu3 %v1792_v13 }
 0x194   :  { %918 = vmatpush.msra.mxu0 %v1701_v43  ;;  %938 = vmatpush.msra.mxu1 %v1703_v44 }
 0x195   :  { %958 = vmatpush.msra.mxu2 %v1798_v14  ;;  %978 = vmatpush.msra.mxu3 %v1800_v19 }
 0x196   :  { %919 = vmatpush.msra.mxu0 %v1717_v49  ;;  %939 = vmatpush.msra.mxu1 %v1719_v50 }
 0x197   :  { %959 = vmatpush.msra.mxu2 %v1806_v22  ;;  %979 = vmatpush.msra.mxu3 %v2628_v0 }
 0x198   :  { %920 = vmatpush.msra.mxu0 %v2629_v40  ;;  %940 = vmatpush.msra.mxu1 %v2630_v37 }
 0x199   :  { %960 = vmatpush.msra.mxu2 %v2631_v38  ;;  %980 = vmatpush.msra.mxu3 %v2632_v47 }
 0x19a   :  { %921 = vmatpush.msra.mxu0 %v2633_v60  ;;  %941 = vmatpush.msra.mxu1 %v2649_v11 }
 0x19b   :  { %961 = vmatpush.msra.mxu2 %v2650_v12  ;;  %981 = vmatpush.msra.mxu3 %v2651_v15 }
 0x19c   :  { %922 = vmatpush.msra.mxu0 %v2652_v16  ;;  %942 = vmatpush.msra.mxu1 %v2653_v18 }
 0x19d   :  { %962 = vmatpush.msra.mxu2 %v2654_v20  ;;  %982 = vmatpush.msra.mxu3 %v2655_v21 }
 0x19e   :  { %923 = vmatpush.msra.mxu0 %v2656_v24  ;;  %943 = vmatpush.msra.mxu1 %v2657_v25 }
 0x19f   :  { %963 = vmatpush.msra.mxu2 %v2658_v26  ;;  %983 = vmatpush.msra.mxu3 %v2659_v27 }
 0x1a0   :  { %924 = vmatpush.msra.mxu0 %v2660_v29  ;;  %944 = vmatpush.msra.mxu1 %v2661_v30 }
 0x1a1   :  { %964 = vmatpush.msra.mxu2 %v2647_v8  ;;  %984 = vmatpush.msra.mxu3 %v2648_v5 }
 0x1fd   :  { %v738_v33 = vpop.f32.mrf.mxu0  ;;  %v758_v34 = vpop.f32.mrf.mxu1 }
 0x1fe   :  { %v759_v44 = vadd.f32 %v758_v34, %v738_v33  ;;  %v2293_v33 = vld [vmem:[#allocation3 + $0x68] sm:$0xff] }
 0x1ff   :  { %v2296_v34 = vld [vmem:[#allocation3 + $0x168] sm:$0xff] }
 0x204   :  { %v778_v35 = vpop.f32.mrf.mxu2  ;;  %v798_v36 = vpop.f32.mrf.mxu3 }
 0x205   :  { %v799_v43 = vadd.f32 %v798_v36, %v778_v35  ;;  %v2299_v35 = vld [vmem:[#allocation3 + $0x50] sm:$0xff] }
 0x206   :  { %v2302_v36 = vld [vmem:[#allocation3 + $0x150] sm:$0xff] }
 0x207   :  { %v803_v28 = vrot.slane %v799_v43, 6  ;;  %v2305_v43 = vld [vmem:[#allocation3 + $0x58] sm:$0xff] }
 0x209   :  { %v804_v48 = vsel %vm101_vm2, %v759_v44, %v803_v28  ;;  %v2308_v44 = vld [vmem:[#allocation3 + $0x158] sm:$0xff]  ;;  %v2311_v28 = vld [vmem:[#allocation3 + $0x40] sm:$0xff] }
 0x20a   :  { %v806_v57 = vadd.f32 %v804_v48, %v714_v61  ;;  %v2314_v61 = vld [vmem:[#allocation3 + $0x140] sm:$0xff]  ;;  %v2317_v48 = vld [vmem:[#allocation3 + $0x48] sm:$0xff] }
 0x20c   :  { %1405 = vtanh.f32 %v806_v57  ;;  %v2320_v57 = vld [vmem:[#allocation3 + $0x148] sm:$0xff] }
 0x212   :  { %v1406_v17 = vpop.eup %1405 }
 0x213   :  { %810 = vst [vmem:[#allocation1] ss:$4 sm:$0xff] %v1406_v17  ;;  %v2323_v17 = vld [vmem:[#allocation3 + $0x30] sm:$0xff] }
 0x21a   :  { %v811_v23 = vld.sshfl [vmem:[#allocation1] sm:$0xff pattern:$0x73625140]  ;;  %v812_v32 = vld.sshfl [vmem:[#allocation1 + $0x8] sm:$0xff pattern:$0x73625140] }
 0x21b   :  { %831 = vmatmul.f32.vlgmr.msrb.gmra.mxu0 %v811_v23  ;;  %851 = vmatmul.f32.vlgmr.msrb.gmra.mxu1 %v812_v32 }
 0x21c   :  { %871 = vmatmul.f32.vlgmr.msrb.gmra.mxu2 %v811_v23  ;;  %891 = vmatmul.f32.vlgmr.msrb.gmra.mxu3 %v812_v32  ;;  %v2326_v23 = vld [vmem:[#allocation3 + $0x130] sm:$0xff]  ;;  %v2329_v32 = vld [vmem:[#allocation3 + $0x38] sm:$0xff] }
 0x21d   :  { %1003 = vmatpush.msrb.mxu0 %v2114_v9  ;;  %1023 = vmatpush.msrb.mxu1 %v2117_v54  ;;  %2662 = vst [vmem:[#allocation9_spill] sm:$0xff] %v2329_v32 }
 0x21e   :  { %1043 = vmatpush.msrb.mxu2 %v1695_v41  ;;  %1063 = vmatpush.msrb.mxu3 %v1697_v42  ;;  %v2138_v41 = vld [vmem:[#allocation3 + $0xc0] sm:$0xff] }
 0x21f   :  { %1004 = vmatpush.msrb.mxu0 %v2122_v31  ;;  %1024 = vmatpush.msrb.mxu1 %v2125_v1  ;;  %v2141_v42 = vld [vmem:[#allocation3 + $0x1c0] sm:$0xff] }
 0x220   :  { %1044 = vmatpush.msrb.mxu2 %v1709_v45  ;;  %1064 = vmatpush.msrb.mxu3 %v1711_v46  ;;  %v2146_v45 = vld [vmem:[#allocation3 + $0xb0] sm:$0xff] }
 0x221   :  { %1005 = vmatpush.msrb.mxu0 %v2130_v39  ;;  %1025 = vmatpush.msrb.mxu1 %v2133_v53  ;;  %v2149_v46 = vld [vmem:[#allocation3 + $0x1b0] sm:$0xff] }
 0x222   :  { %1045 = vmatpush.msrb.mxu2 %v1721_v51  ;;  %1065 = vmatpush.msrb.mxu3 %v1723_v52  ;;  %v2154_v51 = vld [vmem:[#allocation3 + $0xa0] sm:$0xff] }
 0x223   :  { %1006 = vmatpush.msrb.mxu0 %v2138_v41  ;;  %1026 = vmatpush.msrb.mxu1 %v2141_v42  ;;  %v2157_v52 = vld [vmem:[#allocation3 + $0x1a0] sm:$0xff] }
 0x224   :  { %1046 = vmatpush.msrb.mxu2 %v1733_v55  ;;  %1066 = vmatpush.msrb.mxu3 %v1735_v56  ;;  %v2162_v55 = vld [vmem:[#allocation3 + $0x90] sm:$0xff] }
 0x225   :  { %1007 = vmatpush.msrb.mxu0 %v2146_v45  ;;  %1027 = vmatpush.msrb.mxu1 %v2149_v46  ;;  %v2165_v56 = vld [vmem:[#allocation3 + $0x190] sm:$0xff] }
 0x226   :  { %1047 = vmatpush.msrb.mxu2 %v1742_v58  ;;  %1067 = vmatpush.msrb.mxu3 %v1744_v59  ;;  %v2170_v58 = vld [vmem:[#allocation3 + $0x80] sm:$0xff] }
 0x227   :  { %1008 = vmatpush.msrb.mxu0 %v2154_v51  ;;  %1028 = vmatpush.msrb.mxu1 %v2157_v52  ;;  %v2173_v59 = vld [vmem:[#allocation3 + $0x180] sm:$0xff] }
 0x228   :  { %1048 = vmatpush.msrb.mxu2 %v1754_v62  ;;  %1068 = vmatpush.msrb.mxu3 %v1756_v63  ;;  %v2178_v62 = vld [vmem:[#allocation3 + $0x70] sm:$0xff] }
 0x229   :  { %1009 = vmatpush.msrb.mxu0 %v2162_v55  ;;  %1029 = vmatpush.msrb.mxu1 %v2165_v56  ;;  %v2181_v63 = vld [vmem:[#allocation3 + $0x170] sm:$0xff] }
 0x22a   :  { %1049 = vmatpush.msrb.mxu2 %v1766_v2  ;;  %1069 = vmatpush.msrb.mxu3 %v1768_v3  ;;  %v2186_v2 = vld [vmem:[#allocation3 + $0x60] sm:$0xff] }
 0x22b   :  { %1010 = vmatpush.msrb.mxu0 %v2170_v58  ;;  %1030 = vmatpush.msrb.mxu1 %v2173_v59  ;;  %v2189_v3 = vld [vmem:[#allocation3 + $0x160] sm:$0xff] }
 0x22c   :  { %1050 = vmatpush.msrb.mxu2 %v1778_v6  ;;  %1070 = vmatpush.msrb.mxu3 %v1780_v7 }
 0x22d   :  { %1011 = vmatpush.msrb.mxu0 %v2178_v62  ;;  %1031 = vmatpush.msrb.mxu1 %v2181_v63 }
 0x22e   :  { %1051 = vmatpush.msrb.mxu2 %v1790_v10  ;;  %1071 = vmatpush.msrb.mxu3 %v1792_v13 }
 0x22f   :  { %1012 = vmatpush.msrb.mxu0 %v2186_v2  ;;  %1032 = vmatpush.msrb.mxu1 %v2189_v3 }
 0x230   :  { %1052 = vmatpush.msrb.mxu2 %v1798_v14  ;;  %1072 = vmatpush.msrb.mxu3 %v1800_v19  ;;  %v808_v19 = vld [vmem:[#allocation2 + $0xc] sm:$0xf] }
 0x231   :  { %1013 = vmatpush.msrb.mxu0 %v1717_v49  ;;  %1033 = vmatpush.msrb.mxu1 %v1719_v50 }
 0x232   :  { %1053 = vmatpush.msrb.mxu2 %v1806_v22  ;;  %1073 = vmatpush.msrb.mxu3 %v2628_v0 }
 0x233   :  { %1014 = vmatpush.msrb.mxu0 %v2629_v40  ;;  %1034 = vmatpush.msrb.mxu1 %v2630_v37 }
 0x234   :  { %1054 = vmatpush.msrb.mxu2 %v2631_v38  ;;  %1074 = vmatpush.msrb.mxu3 %v2632_v47  ;;  %v2221_v47 = vld [vmem:[#allocation3 + $0xf8] sm:$0xff] }
 0x235   :  { %1015 = vmatpush.msrb.mxu0 %v2633_v60  ;;  %1035 = vmatpush.msrb.mxu1 %v2649_v11  ;;  %v2224_v60 = vld [vmem:[#allocation3 + $0x1f8] sm:$0xff] }
 0x236   :  { %1055 = vmatpush.msrb.mxu2 %v2650_v12  ;;  %1075 = vmatpush.msrb.mxu3 %v2651_v15  ;;  %v2240_v11 = vld [vmem:[#allocation3 + $0x1d8] sm:$0xff]  ;;  %v2245_v12 = vld [vmem:[#allocation3 + $0xc8] sm:$0xff] }
 0x237   :  { %1016 = vmatpush.msrb.mxu0 %v2652_v16  ;;  %1036 = vmatpush.msrb.mxu1 %v2653_v18  ;;  %v2248_v15 = vld [vmem:[#allocation3 + $0x1c8] sm:$0xff]  ;;  %v2253_v16 = vld [vmem:[#allocation3 + $0xb8] sm:$0xff] }
 0x238   :  { %1056 = vmatpush.msrb.mxu2 %v2654_v20  ;;  %1076 = vmatpush.msrb.mxu3 %v2655_v21  ;;  %v2256_v18 = vld [vmem:[#allocation3 + $0x1b8] sm:$0xff]  ;;  %v2261_v20 = vld [vmem:[#allocation3 + $0xa8] sm:$0xff] }
 0x239   :  { %1017 = vmatpush.msrb.mxu0 %v2656_v24  ;;  %1037 = vmatpush.msrb.mxu1 %v2657_v25  ;;  %v2264_v21 = vld [vmem:[#allocation3 + $0x1a8] sm:$0xff]  ;;  %v2269_v24 = vld [vmem:[#allocation3 + $0x98] sm:$0xff] }
 0x23a   :  { %1057 = vmatpush.msrb.mxu2 %v2658_v26  ;;  %1077 = vmatpush.msrb.mxu3 %v2659_v27  ;;  %v2272_v25 = vld [vmem:[#allocation3 + $0x198] sm:$0xff]  ;;  %v2277_v26 = vld [vmem:[#allocation3 + $0x88] sm:$0xff] }
 0x23b   :  { %1018 = vmatpush.msrb.mxu0 %v2660_v29  ;;  %1038 = vmatpush.msrb.mxu1 %v2661_v30  ;;  %v2280_v27 = vld [vmem:[#allocation3 + $0x188] sm:$0xff]  ;;  %v2285_v29 = vld [vmem:[#allocation3 + $0x78] sm:$0xff] }
 0x23c   :  { %1058 = vmatpush.msrb.mxu2 %v2647_v8  ;;  %1078 = vmatpush.msrb.mxu3 %v2648_v5  ;;  %v2232_v8 = vld [vmem:[#allocation3 + $0x1e8] sm:$0xff]  ;;  %v2237_v5 = vld [vmem:[#allocation3 + $0xd8] sm:$0xff] }
 0x23d   :  { %v2288_v30 = vld [vmem:[#allocation3 + $0x178] sm:$0xff] }
 0x298   :  { %v832_v49 = vpop.f32.mrf.mxu0  ;;  %v852_v50 = vpop.f32.mrf.mxu1 }
 0x299   :  { %v853_v13 = vadd.f32 %v852_v50, %v832_v49  ;;  %v2332_v49 = vld [vmem:[#allocation3 + $0x138] sm:$0xff]  ;;  %v2335_v50 = vld [vmem:[#allocation3 + $0x20] sm:$0xff] }
 0x29a   :  { %2663 = vst [vmem:[#allocation20_spill] sm:$0xff] %v2332_v49 }
 0x29b   :  { %2664 = vst [vmem:[#allocation10_spill] sm:$0xff] %v2335_v50 }
 0x29f   :  { %v872_v6 = vpop.f32.mrf.mxu2  ;;  %v892_v7 = vpop.f32.mrf.mxu3 }
 0x2a0   :  { %v893_v10 = vadd.f32 %v892_v7, %v872_v6  ;;  %v2338_v6 = vld [vmem:[#allocation3 + $0x120] sm:$0xff]  ;;  %v2341_v7 = vld [vmem:[#allocation3 + $0x28] sm:$0xff] }
 0x2a1   :  { %2665 = vst [vmem:[#allocation11_spill] sm:$0xff] %v2338_v6 }
 0x2a2   :  { %v897_v14 = vrot.slane %v893_v10, 6  ;;  %2666 = vst [vmem:[#allocation21_spill] sm:$0xff] %v2341_v7  ;;  %v2344_v10 = vld [vmem:[#allocation3 + $0x128] sm:$0xff] }
 0x2a3   :  { %2667 = vst [vmem:[#allocation22_spill] sm:$0xff] %v2344_v10 }
 0x2a4   :  { %v898_v22 = vsel %vm101_vm2, %v853_v13, %v897_v14  ;;  %v2347_v13 = vld [vmem:[#allocation3 + $0x10] sm:$0xff] }
 0x2a5   :  { %v900_v0 = vadd.f32 %v898_v22, %v808_v19  ;;  %2668 = vst [vmem:[#allocation12_spill] sm:$0xff] %v2347_v13  ;;  %v2350_v14 = vld [vmem:[#allocation3 + $0x110] sm:$0xff]  ;;  %v2353_v19 = vld [vmem:[#allocation3 + $0x18] sm:$0xff] }
 0x2a6   :  { %2669 = vst [vmem:[#allocation29_spill] sm:$0xff] %v2350_v14  ;;  %v2356_v22 = vld [vmem:[#allocation3 + $0x118] sm:$0xff] }
 0x2a7   :  { %1407 = vtanh.f32 %v900_v0  ;;  %2670 = vst [vmem:[#allocation30_spill] sm:$0xff] %v2353_v19  ;;  %v2359_v0 = vld [vmem:[#allocation3] sm:$0xff] }
 0x2a8   :  { %2671 = vst [vmem:[#allocation13_spill] sm:$0xff] %v2356_v22 }
 0x2a9   :  { %2672 = vst [vmem:[#allocation23_spill] sm:$0xff] %v2359_v0 }
 0x2ad   :  { %v1408_v40 = vpop.eup %1407 }
 0x2ae   :  { %904 = vst [vmem:[#allocation1] ss:$4 sm:$0xff] %v1408_v40  ;;  %v2362_v40 = vld [vmem:[#allocation3 + $0x100] sm:$0xff] }
 0x2af   :  { %2673 = vst [vmem:[#allocation24_spill] sm:$0xff] %v2362_v40 }
 0x2b5   :  { %v905_v37 = vld.sshfl [vmem:[#allocation1] sm:$0xff pattern:$0x73625140]  ;;  %v906_v38 = vld.sshfl [vmem:[#allocation1 + $0x8] sm:$0xff pattern:$0x73625140] }
 0x2b6   :  { %925 = vmatmul.f32.vlgmr.msra.gmra.mxu0 %v905_v37  ;;  %945 = vmatmul.f32.vlgmr.msra.gmra.mxu1 %v906_v38 }
 0x2b7   :  { %965 = vmatmul.f32.vlgmr.msra.gmra.mxu2 %v905_v37  ;;  %985 = vmatmul.f32.vlgmr.msra.gmra.mxu3 %v906_v38  ;;  %v2365_v37 = vld [vmem:[#allocation3 + $0x8] sm:$0xff] }
 0x2b8   :  { %1097 = vmatpush.msra.mxu0 %v2114_v9  ;;  %1117 = vmatpush.msra.mxu1 %v2117_v54  ;;  %2674 = vst [vmem:[#allocation14_spill] sm:$0xff] %v2365_v37  ;;  %v2368_v38 = vld [vmem:[#allocation3 + $0x108] sm:$0xff] }
 0x2b9   :  { %1137 = vmatpush.msra.mxu2 %v2221_v47  ;;  %1157 = vmatpush.msra.mxu3 %v2224_v60 }
 0x2ba   :  { %1098 = vmatpush.msra.mxu0 %v2122_v31  ;;  %1118 = vmatpush.msra.mxu1 %v2125_v1 }
 0x2bb   :  { %1138 = vmatpush.msra.mxu2 %v2229_v4  ;;  %1158 = vmatpush.msra.mxu3 %v2232_v8 }
 0x2bc   :  { %1099 = vmatpush.msra.mxu0 %v2130_v39  ;;  %1119 = vmatpush.msra.mxu1 %v2133_v53 }
 0x2bd   :  { %1139 = vmatpush.msra.mxu2 %v2237_v5  ;;  %1159 = vmatpush.msra.mxu3 %v2240_v11 }
 0x2be   :  { %1100 = vmatpush.msra.mxu0 %v2138_v41  ;;  %1120 = vmatpush.msra.mxu1 %v2141_v42 }
 0x2bf   :  { %1140 = vmatpush.msra.mxu2 %v2245_v12  ;;  %1160 = vmatpush.msra.mxu3 %v2248_v15 }
 0x2c0   :  { %1101 = vmatpush.msra.mxu0 %v2146_v45  ;;  %1121 = vmatpush.msra.mxu1 %v2149_v46 }
 0x2c1   :  { %1141 = vmatpush.msra.mxu2 %v2253_v16  ;;  %1161 = vmatpush.msra.mxu3 %v2256_v18 }
 0x2c2   :  { %1102 = vmatpush.msra.mxu0 %v2154_v51  ;;  %1122 = vmatpush.msra.mxu1 %v2157_v52 }
 0x2c3   :  { %1142 = vmatpush.msra.mxu2 %v2261_v20  ;;  %1162 = vmatpush.msra.mxu3 %v2264_v21 }
 0x2c4   :  { %1103 = vmatpush.msra.mxu0 %v2162_v55  ;;  %1123 = vmatpush.msra.mxu1 %v2165_v56 }
 0x2c5   :  { %1143 = vmatpush.msra.mxu2 %v2269_v24  ;;  %1163 = vmatpush.msra.mxu3 %v2272_v25 }
 0x2c6   :  { %1104 = vmatpush.msra.mxu0 %v2170_v58  ;;  %1124 = vmatpush.msra.mxu1 %v2173_v59 }
 0x2c7   :  { %1144 = vmatpush.msra.mxu2 %v2277_v26  ;;  %1164 = vmatpush.msra.mxu3 %v2280_v27 }
 0x2c8   :  { %1105 = vmatpush.msra.mxu0 %v2178_v62  ;;  %1125 = vmatpush.msra.mxu1 %v2181_v63 }
 0x2c9   :  { %1145 = vmatpush.msra.mxu2 %v2285_v29  ;;  %1165 = vmatpush.msra.mxu3 %v2288_v30 }
 0x2ca   :  { %1106 = vmatpush.msra.mxu0 %v2186_v2  ;;  %1126 = vmatpush.msra.mxu1 %v2189_v3 }
 0x2cb   :  { %1146 = vmatpush.msra.mxu2 %v2293_v33  ;;  %1166 = vmatpush.msra.mxu3 %v2296_v34 }
 0x2cc   :  { %1107 = vmatpush.msra.mxu0 %v2299_v35  ;;  %1127 = vmatpush.msra.mxu1 %v2302_v36 }
 0x2cd   :  { %1147 = vmatpush.msra.mxu2 %v2305_v43  ;;  %1167 = vmatpush.msra.mxu3 %v2308_v44 }
 0x2ce   :  { %1108 = vmatpush.msra.mxu0 %v2311_v28  ;;  %1128 = vmatpush.msra.mxu1 %v2314_v61 }
 0x2cf   :  { %1148 = vmatpush.msra.mxu2 %v2317_v48  ;;  %1168 = vmatpush.msra.mxu3 %v2320_v57 }
 0x2d0   :  { %1109 = vmatpush.msra.mxu0 %v2323_v17  ;;  %1129 = vmatpush.msra.mxu1 %v2326_v23 }
 0x2d1   :  { %1149 = vmatpush.msra.mxu2 %v2329_v32  ;;  %1169 = vmatpush.msra.mxu3 %v2332_v49 }
 0x2d2   :  { %1110 = vmatpush.msra.mxu0 %v2335_v50  ;;  %1130 = vmatpush.msra.mxu1 %v2338_v6 }
 0x2d3   :  { %1150 = vmatpush.msra.mxu2 %v2341_v7  ;;  %1170 = vmatpush.msra.mxu3 %v2344_v10 }
 0x2d4   :  { %1111 = vmatpush.msra.mxu0 %v2347_v13  ;;  %1131 = vmatpush.msra.mxu1 %v2350_v14 }
 0x2d5   :  { %1151 = vmatpush.msra.mxu2 %v2353_v19  ;;  %1171 = vmatpush.msra.mxu3 %v2356_v22 }
 0x2d6   :  { %1112 = vmatpush.msra.mxu0 %v2359_v0  ;;  %1132 = vmatpush.msra.mxu1 %v2362_v40  ;;  %v902_v0 = vld [vmem:[#allocation2 + $0x10] sm:$0xf] }
 0x2d7   :  { %1152 = vmatpush.msra.mxu2 %v2365_v37  ;;  %1172 = vmatpush.msra.mxu3 %v2368_v38 }
 0x333   :  { %v926_v19 = vpop.f32.mrf.mxu0  ;;  %v946_v14 = vpop.f32.mrf.mxu1 }
 0x334   :  { %v947_v7 = vadd.f32 %v946_v14, %v926_v19  ;;  %v1284_v14 = vld [vmem:[%s2545_s4 + $0x30] sm:$0xff] }
 0x335   :  { %v1300_v19 = vld [vmem:[%s2545_s4 + $0xb0] sm:$0xff] }
 0x33a   :  { %v966_v13 = vpop.f32.mrf.mxu2  ;;  %v986_v22 = vpop.f32.mrf.mxu3 }
 0x33b   :  { %v987_v10 = vadd.f32 %v986_v22, %v966_v13  ;;  %v1301_v13 = vld [vmem:[%s2545_s4 + $0xb8] sm:$0xff]  ;;  %v1283_v22 = vld [vmem:[%s2545_s4 + $0x28] sm:$0xff] }
 0x33d   :  { %v991_v6 = vrot.slane %v987_v10, 6  ;;  %v1285_v10 = vld [vmem:[%s2545_s4 + $0x38] sm:$0xff] }
 0x33f   :  { %v992_v50 = vsel %vm101_vm2, %v947_v7, %v991_v6  ;;  %v1286_v6 = vld [vmem:[%s2545_s4 + $0x40] sm:$0xff] }
 0x340   :  { %v994_v49 = vadd.f32 %v992_v50, %v902_v0  ;;  %v1303_v50 = vld [vmem:[%s2545_s4 + $0xc8] sm:$0xff]  ;;  %v1302_v7 = vld [vmem:[%s2545_s4 + $0xc0] sm:$0xff] }
 0x341   :  { %v1299_v0 = vld [vmem:[%s2545_s4 + $0xa8] sm:$0xff] }
 0x342   :  { %1409 = vtanh.f32 %v994_v49  ;;  %v1287_v49 = vld [vmem:[%s2545_s4 + $0x48] sm:$0xff] }
 0x348   :  { %v1410_v40 = vpop.eup %1409 }
 0x349   :  { %998 = vst [vmem:[#allocation1] ss:$4 sm:$0xff] %v1410_v40  ;;  %v1282_v40 = vld [vmem:[%s2545_s4 + $0x20] sm:$0xff] }
 0x350   :  { %v999_v32 = vld.sshfl [vmem:[#allocation1] sm:$0xff pattern:$0x73625140]  ;;  %v1000_v37 = vld.sshfl [vmem:[#allocation1 + $0x8] sm:$0xff pattern:$0x73625140] }
 0x351   :  { %1019 = vmatmul.f32.vlgmr.msrb.gmra.mxu0 %v999_v32  ;;  %1039 = vmatmul.f32.vlgmr.msrb.gmra.mxu1 %v1000_v37 }
 0x352   :  { %1059 = vmatmul.f32.vlgmr.msrb.gmra.mxu2 %v999_v32  ;;  %1079 = vmatmul.f32.vlgmr.msrb.gmra.mxu3 %v1000_v37  ;;  %v1304_v32 = vld [vmem:[%s2545_s4 + $0xd0] sm:$0xff]  ;;  %v1298_v37 = vld [vmem:[%s2545_s4 + $0xa0] sm:$0xff] }
 0x353   :  { %1191 = vmatpush.msrb.mxu0 %v2114_v9  ;;  %1211 = vmatpush.msrb.mxu1 %v2117_v54  ;;  %v2675_v9 = vld [vmem:[#allocation9_spill] sm:$0xff]  ;;  %v2676_v54 = vld [vmem:[#allocation20_spill] sm:$0xff] }
 0x354   :  { %1231 = vmatpush.msrb.mxu2 %v2221_v47  ;;  %1251 = vmatpush.msrb.mxu3 %v2224_v60  ;;  %v996_v47 = vld [vmem:[#allocation2 + $0x14] sm:$0xf] }
 0x355   :  { %1192 = vmatpush.msrb.mxu0 %v2122_v31  ;;  %1212 = vmatpush.msrb.mxu1 %v2125_v1  ;;  %v2677_v31 = vld [vmem:[#allocation10_spill] sm:$0xff]  ;;  %v2678_v1 = vld [vmem:[#allocation11_spill] sm:$0xff] }
 0x356   :  { %1232 = vmatpush.msrb.mxu2 %v2229_v4  ;;  %1252 = vmatpush.msrb.mxu3 %v2232_v8 }
 0x357   :  { %1193 = vmatpush.msrb.mxu0 %v2130_v39  ;;  %1213 = vmatpush.msrb.mxu1 %v2133_v53  ;;  %v2679_v39 = vld [vmem:[#allocation21_spill] sm:$0xff]  ;;  %v2680_v53 = vld [vmem:[#allocation22_spill] sm:$0xff] }
 0x358   :  { %1233 = vmatpush.msrb.mxu2 %v2237_v5  ;;  %1253 = vmatpush.msrb.mxu3 %v2240_v11 }
 0x359   :  { %1194 = vmatpush.msrb.mxu0 %v2138_v41  ;;  %1214 = vmatpush.msrb.mxu1 %v2141_v42  ;;  %v2681_v41 = vld [vmem:[#allocation12_spill] sm:$0xff]  ;;  %v2682_v42 = vld [vmem:[#allocation29_spill] sm:$0xff] }
 0x35a   :  { %1234 = vmatpush.msrb.mxu2 %v2245_v12  ;;  %1254 = vmatpush.msrb.mxu3 %v2248_v15  ;;  %v1293_v12 = vld [vmem:[%s2545_s4 + $0x78] sm:$0xff] }
 0x35b   :  { %1195 = vmatpush.msrb.mxu0 %v2146_v45  ;;  %1215 = vmatpush.msrb.mxu1 %v2149_v46  ;;  %v2683_v45 = vld [vmem:[#allocation30_spill] sm:$0xff]  ;;  %v2684_v46 = vld [vmem:[#allocation13_spill] sm:$0xff] }
 0x35c   :  { %1235 = vmatpush.msrb.mxu2 %v2253_v16  ;;  %1255 = vmatpush.msrb.mxu3 %v2256_v18  ;;  %v1309_v15 = vld [vmem:[%s2545_s4 + $0xf8] sm:$0xff] }
 0x35d   :  { %1196 = vmatpush.msrb.mxu0 %v2154_v51  ;;  %1216 = vmatpush.msrb.mxu1 %v2157_v52  ;;  %v2685_v51 = vld [vmem:[#allocation23_spill] sm:$0xff]  ;;  %v2686_v52 = vld [vmem:[#allocation24_spill] sm:$0xff] }
 0x35e   :  { %1236 = vmatpush.msrb.mxu2 %v2261_v20  ;;  %1256 = vmatpush.msrb.mxu3 %v2264_v21 }
 0x35f   :  { %1197 = vmatpush.msrb.mxu0 %v2162_v55  ;;  %1217 = vmatpush.msrb.mxu1 %v2165_v56  ;;  %v2687_v55 = vld [vmem:[#allocation14_spill] sm:$0xff] }
 0x360   :  { %1237 = vmatpush.msrb.mxu2 %v2269_v24  ;;  %1257 = vmatpush.msrb.mxu3 %v2272_v25 }
 0x361   :  { %1198 = vmatpush.msrb.mxu0 %v2170_v58  ;;  %1218 = vmatpush.msrb.mxu1 %v2173_v59 }
 0x362   :  { %1238 = vmatpush.msrb.mxu2 %v2277_v26  ;;  %1258 = vmatpush.msrb.mxu3 %v2280_v27  ;;  %v1090_v27 = vld [vmem:[#allocation2 + $0x18] sm:$0xf] }
 0x363   :  { %1199 = vmatpush.msrb.mxu0 %v2178_v62  ;;  %1219 = vmatpush.msrb.mxu1 %v2181_v63 }
 0x364   :  { %1239 = vmatpush.msrb.mxu2 %v2285_v29  ;;  %1259 = vmatpush.msrb.mxu3 %v2288_v30 }
 0x365   :  { %1200 = vmatpush.msrb.mxu0 %v2186_v2  ;;  %1220 = vmatpush.msrb.mxu1 %v2189_v3 }
 0x366   :  { %1240 = vmatpush.msrb.mxu2 %v2293_v33  ;;  %1260 = vmatpush.msrb.mxu3 %v2296_v34 }
 0x367   :  { %1201 = vmatpush.msrb.mxu0 %v2299_v35  ;;  %1221 = vmatpush.msrb.mxu1 %v2302_v36  ;;  %v1292_v36 = vld [vmem:[%s2545_s4 + $0x70] sm:$0xff] }
 0x368   :  { %1241 = vmatpush.msrb.mxu2 %v2305_v43  ;;  %1261 = vmatpush.msrb.mxu3 %v2308_v44  ;;  %v1308_v43 = vld [vmem:[%s2545_s4 + $0xf0] sm:$0xff]  ;;  %v1291_v44 = vld [vmem:[%s2545_s4 + $0x68] sm:$0xff] }
 0x369   :  { %1202 = vmatpush.msrb.mxu0 %v2311_v28  ;;  %1222 = vmatpush.msrb.mxu1 %v2314_v61  ;;  %v1307_v28 = vld [vmem:[%s2545_s4 + $0xe8] sm:$0xff]  ;;  %v1290_v61 = vld [vmem:[%s2545_s4 + $0x60] sm:$0xff] }
 0x36a   :  { %1242 = vmatpush.msrb.mxu2 %v2317_v48  ;;  %1262 = vmatpush.msrb.mxu3 %v2320_v57  ;;  %v1306_v48 = vld [vmem:[%s2545_s4 + $0xe0] sm:$0xff]  ;;  %v1289_v57 = vld [vmem:[%s2545_s4 + $0x58] sm:$0xff] }
 0x36b   :  { %1203 = vmatpush.msrb.mxu0 %v2323_v17  ;;  %1223 = vmatpush.msrb.mxu1 %v2326_v23  ;;  %v1305_v17 = vld [vmem:[%s2545_s4 + $0xd8] sm:$0xff]  ;;  %v1288_v23 = vld [vmem:[%s2545_s4 + $0x50] sm:$0xff] }
 0x36c   :  { %1243 = vmatpush.msrb.mxu2 %v2675_v9  ;;  %1263 = vmatpush.msrb.mxu3 %v2676_v54  ;;  %v1297_v9 = vld [vmem:[%s2545_s4 + $0x98] sm:$0xff]  ;;  %v1280_v54 = vld [vmem:[%s2545_s4 + $0x10] sm:$0xff] }
 0x36d   :  { %1204 = vmatpush.msrb.mxu0 %v2677_v31  ;;  %1224 = vmatpush.msrb.mxu1 %v2678_v1  ;;  %v1296_v31 = vld [vmem:[%s2545_s4 + $0x90] sm:$0xff]  ;;  %v1279_v1 = vld [vmem:[%s2545_s4 + $0x8] sm:$0xff] }
 0x36e   :  { %1244 = vmatpush.msrb.mxu2 %v2679_v39  ;;  %1264 = vmatpush.msrb.mxu3 %v2680_v53  ;;  %v1295_v39 = vld [vmem:[%s2545_s4 + $0x88] sm:$0xff]  ;;  %v1278_v53 = vld [vmem:[%s2545_s4] sm:$0xff] }
 0x36f   :  { %1205 = vmatpush.msrb.mxu0 %v2681_v41  ;;  %1225 = vmatpush.msrb.mxu1 %v2682_v42  ;;  %v1294_v41 = vld [vmem:[%s2545_s4 + $0x80] sm:$0xff] }
 0x370   :  { %1245 = vmatpush.msrb.mxu2 %v2683_v45  ;;  %1265 = vmatpush.msrb.mxu3 %v2684_v46 }
 0x371   :  { %1206 = vmatpush.msrb.mxu0 %v2685_v51  ;;  %1226 = vmatpush.msrb.mxu1 %v2686_v52 }
 0x372   :  { %1246 = vmatpush.msrb.mxu2 %v2687_v55  ;;  %1266 = vmatpush.msrb.mxu3 %v2368_v38  ;;  %v1281_v38 = vld [vmem:[%s2545_s4 + $0x18] sm:$0xff] }
 0x3ce   :  { %v1020_v56 = vpop.f32.mrf.mxu0  ;;  %v1040_v58 = vpop.f32.mrf.mxu1 }
 0x3cf   :  { %v1041_v2 = vadd.f32 %v1040_v58, %v1020_v56  ;;  %v1184_v58 = vld [vmem:[#allocation2 + $0x1c] sm:$0xf] }
 0x3d5   :  { %v1060_v59 = vpop.f32.mrf.mxu2  ;;  %v1080_v62 = vpop.f32.mrf.mxu3 }
 0x3d6   :  { %v1081_v63 = vadd.f32 %v1080_v62, %v1060_v59 }
 0x3d8   :  { %v1085_v3 = vrot.slane %v1081_v63, 6 }
 0x3da   :  { %v1086_v60 = vsel %vm101_vm2, %v1041_v2, %v1085_v3 }
 0x3db   :  { %v1088_v4 = vadd.f32 %v1086_v60, %v996_v47  ;;  %v1400_v47 = vld [vmem:[%s2546_s5] ss:$0 sm:$0xff] }
 0x3dd   :  { %1411 = vtanh.f32 %v1088_v4 }
 0x3e3   :  { %v1412_v8 = vpop.eup %1411 }
 0x3e4   :  { %1092 = vst [vmem:[#allocation1] ss:$4 sm:$0xff] %v1412_v8 }
 0x3eb   :  { %v1093_v5 = vld.sshfl [vmem:[#allocation1] sm:$0xff pattern:$0x73625140]  ;;  %v1094_v11 = vld.sshfl [vmem:[#allocation1 + $0x8] sm:$0xff pattern:$0x73625140] }
 0x3ec   :  { %1113 = vmatmul.f32.vlgmr.msra.gmra.mxu0 %v1093_v5  ;;  %1133 = vmatmul.f32.vlgmr.msra.gmra.mxu1 %v1094_v11 }
 0x3ed   :  { %1153 = vmatmul.f32.vlgmr.msra.gmra.mxu2 %v1093_v5  ;;  %1173 = vmatmul.f32.vlgmr.msra.gmra.mxu3 %v1094_v11 }
 0x3ee   :  { %1320 = vmatpush.msra.mxu0 %v1293_v12  ;;  %1340 = vmatpush.msra.mxu1 %v1309_v15 }
 0x3f0   :  { %1321 = vmatpush.msra.mxu0 %v1292_v36  ;;  %1341 = vmatpush.msra.mxu1 %v1308_v43 }
 0x3f2   :  { %1322 = vmatpush.msra.mxu0 %v1291_v44  ;;  %1342 = vmatpush.msra.mxu1 %v1307_v28 }
 0x3f4   :  { %1323 = vmatpush.msra.mxu0 %v1290_v61  ;;  %1343 = vmatpush.msra.mxu1 %v1306_v48 }
 0x3f6   :  { %1324 = vmatpush.msra.mxu0 %v1289_v57  ;;  %1344 = vmatpush.msra.mxu1 %v1305_v17 }
 0x3f8   :  { %1325 = vmatpush.msra.mxu0 %v1288_v23  ;;  %1345 = vmatpush.msra.mxu1 %v1304_v32 }
 0x3fa   :  { %1326 = vmatpush.msra.mxu0 %v1287_v49  ;;  %1346 = vmatpush.msra.mxu1 %v1303_v50 }
 0x3fc   :  { %1327 = vmatpush.msra.mxu0 %v1286_v6  ;;  %1347 = vmatpush.msra.mxu1 %v1302_v7 }
 0x3fe   :  { %1328 = vmatpush.msra.mxu0 %v1285_v10  ;;  %1348 = vmatpush.msra.mxu1 %v1301_v13 }
 0x400   :  { %1329 = vmatpush.msra.mxu0 %v1284_v14  ;;  %1349 = vmatpush.msra.mxu1 %v1300_v19 }
 0x402   :  { %1330 = vmatpush.msra.mxu0 %v1283_v22  ;;  %1350 = vmatpush.msra.mxu1 %v1299_v0 }
 0x404   :  { %1331 = vmatpush.msra.mxu0 %v1282_v40  ;;  %1351 = vmatpush.msra.mxu1 %v1298_v37 }
 0x406   :  { %1332 = vmatpush.msra.mxu0 %v1281_v38  ;;  %1352 = vmatpush.msra.mxu1 %v1297_v9 }
 0x408   :  { %1333 = vmatpush.msra.mxu0 %v1280_v54  ;;  %1353 = vmatpush.msra.mxu1 %v1296_v31 }
 0x40a   :  { %1334 = vmatpush.msra.mxu0 %v1279_v1  ;;  %1354 = vmatpush.msra.mxu1 %v1295_v39 }
 0x40c   :  { %1335 = vmatpush.msra.mxu0 %v1278_v53  ;;  %1355 = vmatpush.msra.mxu1 %v1294_v41 }
 0x469   :  { %v1114_v16 = vpop.f32.mrf.mxu0  ;;  %v1134_v18 = vpop.f32.mrf.mxu1 }
 0x46a   :  { %v1135_v25 = vadd.f32 %v1134_v18, %v1114_v16 }
 0x470   :  { %v1154_v20 = vpop.f32.mrf.mxu2  ;;  %v1174_v21 = vpop.f32.mrf.mxu3 }
 0x471   :  { %v1175_v24 = vadd.f32 %v1174_v21, %v1154_v20 }
 0x473   :  { %v1179_v26 = vrot.slane %v1175_v24, 6 }
 0x475   :  { %v1180_v29 = vsel %vm101_vm2, %v1135_v25, %v1179_v26 }
 0x476   :  { %v1182_v30 = vadd.f32 %v1180_v29, %v1090_v27 }
 0x478   :  { %1413 = vtanh.f32 %v1182_v30 }
 0x47e   :  { %v1414_v33 = vpop.eup %1413 }
 0x47f   :  { %1186 = vst [vmem:[#allocation1] ss:$4 sm:$0xff] %v1414_v33 }
 0x486   :  { %v1187_v34 = vld.sshfl [vmem:[#allocation1] sm:$0xff pattern:$0x73625140]  ;;  %v1188_v35 = vld.sshfl [vmem:[#allocation1 + $0x8] sm:$0xff pattern:$0x73625140] }
 0x487   :  { %1207 = vmatmul.f32.vlgmr.msrb.gmra.mxu0 %v1187_v34  ;;  %1227 = vmatmul.f32.vlgmr.msrb.gmra.mxu1 %v1188_v35 }
 0x488   :  { %1247 = vmatmul.f32.vlgmr.msrb.gmra.mxu2 %v1187_v34  ;;  %1267 = vmatmul.f32.vlgmr.msrb.gmra.mxu3 %v1188_v35 }
 0x504   :  { %v1208_v42 = vpop.f32.mrf.mxu0  ;;  %v1228_v45 = vpop.f32.mrf.mxu1 }
 0x505   :  { %v1229_v55 = vadd.f32 %v1228_v45, %v1208_v42 }
 0x50b   :  { %v1248_v46 = vpop.f32.mrf.mxu2  ;;  %v1268_v51 = vpop.f32.mrf.mxu3 }
 0x50c   :  { %v1269_v52 = vadd.f32 %v1268_v51, %v1248_v46 }
 0x50e   :  { %v1273_v56 = vrot.slane %v1269_v52, 6 }
 0x510   :  { %v1274_v59 = vsel %vm101_vm2, %v1229_v55, %v1273_v56 }
 0x511   :  { %v1276_v62 = vadd.f32 %v1274_v59, %v1184_v58 }
 0x513   :  { %1415 = vtanh.f32 %v1276_v62 }
 0x519   :  { %v1416_v63 = vpop.eup %1415 }
 0x51a   :  { %1315 = vst [vmem:[#allocation1] ss:$4 sm:$0xff] %v1416_v63 }
 0x521   :  { %v1316_v2 = vld.sshfl [vmem:[#allocation1] sm:$0xff pattern:$0x73625140]  ;;  %v1317_v3 = vld.sshfl [vmem:[#allocation1 + $0x8] sm:$0xff pattern:$0x73625140] }
 0x522   :  { %1336 = vmatmul.f32.vlgmr.msra.gmra.mxu0 %v1316_v2  ;;  %1356 = vmatmul.f32.vlgmr.msra.gmra.mxu1 %v1317_v3 }
 0x59f   :  { %v1337_v60 = vpop.f32.mrf.mxu0  ;;  %v1357_v8 = vpop.f32.mrf.mxu1 }
 0x5a0   :  { %v1338_v4 = vadd.f32 %v1400_v47, %v1337_v60 }
 0x5a2   :  { %v1358_v5 = vadd.f32 %v1357_v8, %v1338_v4 }
 0x5a4   :  { %1361 = vst.msk [vmem:[#allocation6] sm:$0x3] %vm1360_vm3, %v1358_v5 }
 0x5a5   :  { %1372 = dma.vmem_to_hbm [thread:$0]  %s1368_s20, 32, %s1370_s23, [#allocation5]  }
 0x5a6   :  { %1531 = dma.done.wait [#allocation5], 32  }
 0x5a7   :  { %1532 = vsyncadd [#allocation5], 4294967264 }
 0x5a8   :  { %1377 = vsyncpa [#allocation4], 1 }
 0x5a9   :  { %1378 = vsyncpa [#allocation5], 1 }

</bundles_post_ra>
